<compile_context>
chip_gen: v7x
topology: tpu7x:2x2x1
jax: 0.10.0
libtpu: 0.0.40
codegen_flags: <defaults>
</compile_context>

<pallas_src>
import functools

import jax
import jax.numpy as jnp
from jax.experimental import pallas as pl
from jax.experimental.pallas import tpu as pltpu

_NEG_SLOPE = 0.01  # nn.LeakyReLU default


def _leaky(v):
    return jnp.where(v > 0.0, v, _NEG_SLOPE * v)


def knn_indices(x, k):
    """k nearest neighbours in feature space, self excluded (== torch sort[1:k+1])."""
    B, _, N = x.shape
    xt = jnp.transpose(x, (0, 2, 1))
    xi = -2.0 * jnp.einsum("bnc,bcm->bnm", xt, x,
                           precision=jax.lax.Precision.HIGHEST)
    sq = jnp.sum(xt * xt, axis=2, keepdims=True)
    dist = xi + sq + jnp.transpose(sq, (0, 2, 1))
    dist = jnp.where(jnp.eye(N, dtype=bool)[None], jnp.inf, dist)
    return jnp.argsort(dist, axis=2)[:, :, :k].astype(jnp.int32)   # (B, N, k)


def _pick_tile(n, target=256):
    """Largest point-tile <= target that divides N (multiple of 8 when < N)."""
    if n <= target:
        return n
    for tn in range(target, 7, -8):
        if n % tn == 0:
            return tn
    return n


def _const_map(ndim):
    return lambda b, t: (0,) * ndim


# ---------------------------------------------------------------------------
# Fused per-(batch, point-tile) kernel
# ---------------------------------------------------------------------------
def _bilateral_block_kernel(
        xpf_ref, xpt_ref, idx_ref,
        wc_ref, wd_ref, cfx_ref,                      # conv_fea|conv_xyz block-diag
        wa1_ref, ca1_ref, wa2_ref, ca2_ref,           # conv_all
        wic_ref, wid_ref, cib_ref,                    # inte_conv_hk (A|B fused)
        w2c_ref, w2ed_ref, w2i_ref, c2b_ref,          # conv2 (A|B fused)
        auc_ref, cuc_ref,                             # bn_uc (eval affine, doubled)
        wfc1_ref, cfc1_ref, wfc2_ref, cfc2_ref,       # fc
        wg_ref, cg_ref,                               # g_fc
        xec_ref, xs_ref, g_ref,                       # outputs
        *, k, fin, softmax):
    f32 = jnp.float32
    xp_full = xpf_ref[0]                              # (N,  Fin+8)  whole cloud
    xp_t = xpt_ref[0]                                 # (TN, Fin+8)  this query tile
    idx_t = idx_ref[0]                                # (TN, k) int32
    N = xp_full.shape[0]
    TN = xp_t.shape[0]
    xf_t = xp_t[:, :fin]                              # (TN, Fin)

    # -------- neighbour gather: one fused [fea|xyz] one-hot matmul per slot ---
    ci = jax.lax.broadcasted_iota(jnp.int32, (TN, N), 1)
    d = []                                            # neighbour - central, (TN, Fin+8)
    for j in range(k):
        oh = (ci == idx_t[:, j:j + 1]).astype(f32)                       # (TN, N)
        d.append(jnp.dot(oh, xp_full, preferred_element_type=f32) - xp_t)

    # -------- bilateral weights: block-diag fea|xyz, slot-stacked conv_all ----
    base = jnp.dot(xp_t, wc_ref[...], preferred_element_type=f32) + cfx_ref[...]
    prods = []
    for j in range(k):
        lr = _leaky(base + jnp.dot(d[j], wd_ref[...], preferred_element_type=f32))
        prods.append(lr[:, :16] * lr[:, 16:])         # w_fea * w_xyz   (TN, 16)
    p_all = jnp.concatenate(prods, axis=0)            # (k*TN, 16)
    w_all = _leaky(jnp.dot(p_all, wa1_ref[...], preferred_element_type=f32)
                   + ca1_ref[...])
    w_all = _leaky(jnp.dot(w_all, wa2_ref[...], preferred_element_type=f32)
                   + ca2_ref[...])                    # (k*TN, 2Fin)
    w_list = [w_all[j * TN:(j + 1) * TN] for j in range(k)]
    if softmax:
        m = w_list[0]
        for j in range(1, k):
            m = jnp.maximum(m, w_list[j])
        exps = [jnp.exp(wj - m) for wj in w_list]
        s = exps[0]
        for e in exps[1:]:
            s = s + e
        inv_s = 1.0 / s                               # one reciprocal, k multiplies
        w_list = [e * inv_s for e in exps]

    dfe = [dj[:, :fin] for dj in d]                   # feature diffs only

    # -------- conv2, e_fea taps (A/B even-odd output channels fused) ---------
    out = jnp.dot(xf_t, w2c_ref[...], preferred_element_type=f32) + c2b_ref[...]
    for j in range(k):
        out = out + jnp.dot(dfe[j], w2ed_ref[j], preferred_element_type=f32)

    # -------- inte_conv_hk (A/B fused) * bilateral weights, conv2 fused-in ---
    kh = k // 2
    taps = wid_ref.shape[0]                           # k//2 + 1
    base_i = jnp.dot(xf_t, wic_ref[...], preferred_element_type=f32) + cib_ref[...]
    for jp in range(kh):
        acc = base_i
        for t in range(taps):
            acc = acc + jnp.dot(dfe[jp + t], wid_ref[t], preferred_element_type=f32)
        acc = _leaky(acc)                             # (TN, 4Fin) = [even-ch | odd-ch]
        ia = acc[:, :2 * fin] * w_list[jp]            # inte slot jp
        ib = acc[:, 2 * fin:] * w_list[kh + jp]       # inte slot jp + k/2
        out = out + jnp.dot(ia, w2i_ref[jp], preferred_element_type=f32)
        out = out + jnp.dot(ib, w2i_ref[kh + jp], preferred_element_type=f32)

    # -------- BN2d(folded) -> ReLU, bn_uc + LeakyReLU, lane-dense store ------
    out = jnp.maximum(out, 0.0)                       # (TN, 2*Fout) = [A | B]
    xec_ref[0] = _leaky(out * auc_ref[...] + cuc_ref[...])

    # -------- global branch (cheap; recomputed per tile -> fully parallel grid)
    xs = jnp.max(xp_full[:, :fin], axis=0, keepdims=True)        # (1, Fin)
    xs = _leaky(jnp.dot(xs, wfc1_ref[...], preferred_element_type=f32) + cfc1_ref[...])
    xs = _leaky(jnp.dot(xs, wfc2_ref[...], preferred_element_type=f32) + cfc2_ref[...])
    gv = _leaky(jnp.dot(xs, wg_ref[...], preferred_element_type=f32) + cg_ref[...])
    xs_ref[0] = xs
    g_ref[0] = gv


# ---------------------------------------------------------------------------
# Wrapper
# ---------------------------------------------------------------------------
@functools.partial(jax.jit, static_argnames=("maxpool", "num_k", "softmax"))
def bilateral_block_l2_forward(x, pc, params, *, maxpool, num_k=20, softmax=True):
    """x:(B,Fin,N), pc:(B,3,N) -> (x_out (B,2*Fout,2N), g_out (B,512+Fout,2N))."""
    B, Fin, N = x.shape
    k = num_k // 2                      # bilateral_upsample_edgeConv uses num_k // 2
    assert k >= 2 and k % 2 == 0 and k < N, "num_k//2 must be even, >=2 and < N"
    assert maxpool == N, "the module's fc head requires maxpool == point_num"
    Fout = params["bn_uc"][0].shape[0]
    f32 = jnp.float32

    TN = _pick_tile(N)
    n_tiles = N // TN

    # ---- inputs: channels-last, feature|xyz lane-concatenated slab ----------
    x_cl = jnp.transpose(x, (0, 2, 1)).astype(f32)                         # (B, N, Fin)
    pc_cl = jnp.pad(jnp.transpose(pc, (0, 2, 1)).astype(f32),
                    ((0, 0), (0, 0), (0, 5)))                              # (B, N, 8)
    xp = jnp.concatenate([x_cl, pc_cl], axis=2)                            # (B, N, Fin+8)
    idx = knn_indices(x, k)                                                # (B, N, k)

    # ---- parameter prep: bias + eval-BN folded, A/B and fea|xyz fusions ------
    wfea, cfea = params["fea"]          # (2Fin, 16)
    wxyz, cxyz = params["xyz"]          # (6, 16)
    wa1, ca1 = params["all1"]           # (16, 64)
    wa2, ca2 = params["all2"]           # (64, 2Fin)
    wint, cint = params["inte"]         # (k//2+1, 2Fin, 4Fin)
    w2, c2 = params["conv2"]            # (2k, 2Fin, 2Fout)
    auc, cuc = params["bn_uc"]
    wfc1, cfc1 = params["fc1"]
    wfc2, cfc2 = params["fc2"]
    wg, cg = params["gfc"]

    def blockdiag(wf, wx):              # (Fin,16), (3,16) -> (Fin+8, 32)
        top = jnp.concatenate([wf, jnp.zeros((Fin, 16), f32)], axis=1)
        mid = jnp.concatenate([jnp.zeros((3, 16), f32), wx], axis=1)
        bot = jnp.zeros((5, 32), f32)
        return jnp.concatenate([top, mid, bot], axis=0)

    wc_blk = blockdiag(wfea[:Fin], wxyz[:3])          # central halves
    wd_blk = blockdiag(wfea[Fin:], wxyz[3:])          # (neighbour - central) halves
    c_fx = jnp.concatenate([cfea, cxyz]).reshape(1, -1)

    # inte_conv_hk: deinterleave even/odd output channels -> [A | B] lanes
    wi_f = jnp.concatenate([wint[:, :, 0::2], wint[:, :, 1::2]], axis=2)   # (T,2Fin,4Fin)
    wic = wi_f[:, :Fin, :].sum(0)                                          # (Fin, 4Fin)
    wid = wi_f[:, Fin:, :]                                                 # (T, Fin, 4Fin)
    cib = jnp.concatenate([cint[0::2], cint[1::2]]).reshape(1, -1)

    # conv2: deinterleave even/odd output channels -> [A | B] lanes
    w2_f = jnp.concatenate([w2[:, :, 0::2], w2[:, :, 1::2]], axis=2)       # (2k,2Fin,2Fout)
    w2c = w2_f[:k, :Fin, :].sum(0)                                         # (Fin, 2Fout)
    w2ed = w2_f[:k, Fin:, :]                                               # (k, Fin, 2Fout)
    w2i = w2_f[k:]                                                         # (k, 2Fin, 2Fout)
    c2b = jnp.concatenate([c2[0::2], c2[1::2]]).reshape(1, -1)

    auc2 = jnp.concatenate([auc, auc]).reshape(1, -1)                      # (1, 2Fout)
    cuc2 = jnp.concatenate([cuc, cuc]).reshape(1, -1)

    args = (
        xp, xp, idx,
        wc_blk, wd_blk, c_fx,
        wa1, ca1.reshape(1, -1), wa2, ca2.reshape(1, -1),
        wic, wid, cib,
        w2c, w2ed, w2i, c2b,
        auc2, cuc2,
        wfc1, cfc1.reshape(1, -1), wfc2, cfc2.reshape(1, -1),
        wg, cg.reshape(1, -1),
    )

    in_specs = [
        pl.BlockSpec((1, N, Fin + 8), lambda b, t: (b, 0, 0)),     # full cloud (gather RHS)
        pl.BlockSpec((1, TN, Fin + 8), lambda b, t: (b, t, 0)),    # query tile (central rows)
        pl.BlockSpec((1, TN, k), lambda b, t: (b, t, 0)),          # kNN indices of the tile
    ] + [pl.BlockSpec(a.shape, _const_map(a.ndim)) for a in args[3:]]

    out_shape = (
        jax.ShapeDtypeStruct((B, N, 2 * Fout), f32),               # lane-dense [A|B]
        jax.ShapeDtypeStruct((B * n_tiles, 1, Fout), f32),
        jax.ShapeDtypeStruct((B * n_tiles, 1, 512), f32),
    )
    out_specs = [
        pl.BlockSpec((1, TN, 2 * Fout), lambda b, t: (b, t, 0)),
        pl.BlockSpec((1, 1, Fout), lambda b, t: (b * n_tiles + t, 0, 0)),
        pl.BlockSpec((1, 1, 512), lambda b, t: (b * n_tiles + t, 0, 0)),
    ]

    kernel = functools.partial(_bilateral_block_kernel, k=k, fin=Fin, softmax=softmax)
    x_ec_cl, xs_o, g_o = pl.pallas_call(
        kernel,
        out_shape=out_shape,
        grid_spec=pltpu.PrefetchScalarGridSpec(
            num_scalar_prefetch=0,
            grid=(B, n_tiles),
            in_specs=in_specs,
            out_specs=out_specs),
        compiler_params=pltpu.CompilerParams(
            dimension_semantics=("parallel", "parallel"),
            vmem_limit_bytes=48 * 1024 * 1024),
    )(*args)

    # final upsample-stacking / repeat / concat glue (cheap, done with XLA)
    a_half = x_ec_cl[:, :, :Fout]                                 # conv2 even channels
    b_half = x_ec_cl[:, :, Fout:]                                 # conv2 odd channels
    x_ec = jnp.transpose(jnp.concatenate([a_half, b_half], axis=1), (0, 2, 1))  # (B,Fout,2N)
    xs = xs_o.reshape(B, n_tiles, Fout)[:, 0, :]
    g = g_o.reshape(B, n_tiles, 512)[:, 0, :]
    xs_rep = jnp.broadcast_to(xs[:, :, None], (B, Fout, 2 * N))
    g_rep = jnp.broadcast_to(g[:, :, None], (B, 512, 2 * N))
    x_out = jnp.concatenate([xs_rep, x_ec], axis=1)               # (B, 2*Fout, 2N)
    g_out = jnp.concatenate([g_rep, x_ec], axis=1)                # (B, 512+Fout, 2N)
    return x_out, g_out


# ---------------------------------------------------------------------------
# Deterministic parameters (conv/linear bias + eval-mode BN folded)
# ---------------------------------------------------------------------------
def make_params(key, Fin, Fout, num_k):
    k = num_k // 2
    eps = 1e-5
    ks = iter(jax.random.split(key, 64))

    def conv_bn(cin, cout, taps=None, scale=0.05):
        shape = (cin, cout) if taps is None else (taps, cin, cout)
        w = scale * jax.random.normal(next(ks), shape, jnp.float32)
        b = scale * jax.random.normal(next(ks), (cout,), jnp.float32)
        gamma = 1.0 + 0.1 * jax.random.normal(next(ks), (cout,), jnp.float32)
        beta = 0.1 * jax.random.normal(next(ks), (cout,), jnp.float32)
        mean = 0.05 * jax.random.normal(next(ks), (cout,), jnp.float32)
        var = 1.0 + jax.nn.softplus(jax.random.normal(next(ks), (cout,), jnp.float32))
        a = gamma * jax.lax.rsqrt(var + eps)
        return w * a, (b - mean) * a + beta        # scale folded into W, shift kept

    def bn(c):
        gamma = 1.0 + 0.1 * jax.random.normal(next(ks), (c,), jnp.float32)
        beta = 0.1 * jax.random.normal(next(ks), (c,), jnp.float32)
        mean = 0.05 * jax.random.normal(next(ks), (c,), jnp.float32)
        var = 1.0 + jax.nn.softplus(jax.random.normal(next(ks), (c,), jnp.float32))
        a = gamma * jax.lax.rsqrt(var + eps)
        return a, beta - mean * a

    return {
        "fea":   conv_bn(2 * Fin, 16),
        "xyz":   conv_bn(6, 16),
        "all1":  conv_bn(16, 64),
        "all2":  conv_bn(64, 2 * Fin),
        "inte":  conv_bn(2 * Fin, 4 * Fin, taps=k // 2 + 1),
        "conv2": conv_bn(2 * Fin, 2 * Fout, taps=2 * k),
        "bn_uc": bn(Fout),
        "fc1":   conv_bn(Fin, Fin),
        "fc2":   conv_bn(Fin, Fout),
        "gfc":   conv_bn(Fout, 512),
    }


# ---------------------------------------------------------------------------
# Pure-JAX reference (torch op sequence, eval-mode BN folded, all f32)
# ---------------------------------------------------------------------------
def reference(x, pc, p, *, num_k, softmax=True):
    B, Fin, N = x.shape
    k = num_k // 2
    Fout = p["bn_uc"][0].shape[0]
    hp = jax.lax.Precision.HIGHEST

    # ---- get_edge_features_xyz ----
    idx = knn_indices(x, k)                                           # (B, N, k)
    nb = jax.vmap(lambda a, i: a[:, i])(x, idx)                       # (B, Fin, N, k)
    nb_xyz = jax.vmap(lambda a, i: a[:, i])(pc, idx)                  # (B, 3, N, k)
    central = jnp.broadcast_to(x[..., None], (B, Fin, N, k))
    central_xyz = jnp.broadcast_to(pc[..., None], (B, 3, N, k))
    e_fea = jnp.concatenate([central, nb - central], axis=1)          # (B, 2Fin, N, k)
    e_xyz = jnp.concatenate([central_xyz, nb_xyz - central_xyz], axis=1)

    def pw(a, w):  # pointwise 1x1 conv, channels-first
        return jnp.einsum("bcnk,co->bonk", a, w, precision=hp)

    # ---- bilateral weights ----
    w_fea = _leaky(pw(e_fea, p["fea"][0]) + p["fea"][1][None, :, None, None])
    w_xyz = _leaky(pw(e_xyz, p["xyz"][0]) + p["xyz"][1][None, :, None, None])
    w = w_fea * w_xyz
    w = _leaky(pw(w, p["all1"][0]) + p["all1"][1][None, :, None, None])
    w = _leaky(pw(w, p["all2"][0]) + p["all2"][1][None, :, None, None])
    if softmax:
        w = jax.nn.softmax(w, axis=-1)

    # ---- inte_conv_hk + torch transpose/view interleave ----
    wint, cint = p["inte"]
    T = wint.shape[0]
    Kh = k // 2
    cols = []
    for jp in range(Kh):
        acc = cint[None, :, None]
        for t in range(T):
            acc = acc + jnp.einsum("bcn,co->bon", e_fea[..., jp + t], wint[t],
                                   precision=hp)
        cols.append(acc)
    inte = _leaky(jnp.stack(cols, axis=-1))                           # (B, 4Fin, N, k/2)
    inte = jnp.transpose(inte, (0, 2, 1, 3))                          # (B, N, 4Fin, k/2)
    inte = inte.reshape(B, N, 2 * Fin, 2, Kh).reshape(B, N, 2 * Fin, k)
    inte = jnp.transpose(inte, (0, 2, 1, 3))                          # (B, 2Fin, N, k)
    inte = inte * w

    # ---- conv2 + BN2d + ReLU + upsample reshape + bn_uc + LeakyReLU ----
    merge = jnp.concatenate([e_fea, inte], axis=3)                    # (B, 2Fin, N, 2k)
    w2, c2 = p["conv2"]
    out = jnp.einsum("bcnt,tco->bon", merge, w2, precision=hp) + c2[None, :, None]
    out = jnp.maximum(out, 0.0)
    out = out.reshape(B, Fout, 2, N).reshape(B, Fout, 2 * N)
    a_uc, c_uc = p["bn_uc"]
    x_ec = _leaky(out * a_uc[None, :, None] + c_uc[None, :, None])

    # ---- global branch ----
    xs = jnp.max(x, axis=2)                                           # maxpool over N
    xs = _leaky(jnp.dot(xs, p["fc1"][0], precision=hp) + p["fc1"][1][None])
    xs = _leaky(jnp.dot(xs, p["fc2"][0], precision=hp) + p["fc2"][1][None])
    g = _leaky(jnp.dot(xs, p["gfc"][0], precision=hp) + p["gfc"][1][None])
    xs_r = jnp.broadcast_to(xs[:, :, None], (B, Fout, 2 * N))
    g_r = jnp.broadcast_to(g[:, :, None], (B, g.shape[1], 2 * N))
    return (jnp.concatenate([xs_r, x_ec], axis=1),
            jnp.concatenate([g_r, x_ec], axis=1))


if __name__ == "__main__":
    root = jax.random.PRNGKey(0)
    kx, kpc, kp = jax.random.split(root, 3)

    B, Fin, Fout, N, NUM_K = 2, 32, 64, 16, 8     # small shapes; k = NUM_K//2 = 4
    x = jax.random.normal(kx, (B, Fin, N), jnp.float32)
    pc = jax.random.normal(kpc, (B, 3, N), jnp.float32)
    params = make_params(kp, Fin, Fout, NUM_K)

    x_out, g_out = bilateral_block_l2_forward(x, pc, params,
                                              maxpool=N, num_k=NUM_K, softmax=True)
    x_out, g_out = jax.block_until_ready((x_out, g_out))

    x_ref, g_ref = reference(x, pc, params, num_k=NUM_K, softmax=True)
    assert x_out.shape == (B, 2 * Fout, 2 * N), x_out.shape
    assert g_out.shape == (B, 512 + Fout, 2 * N), g_out.shape
    assert jnp.allclose(x_out, x_ref, atol=3e-2, rtol=3e-2), \
        float(jnp.max(jnp.abs(x_out - x_ref)))
    assert jnp.allclose(g_out, g_ref, atol=3e-2, rtol=3e-2), \
        float(jnp.max(jnp.abs(g_out - g_ref)))

    print("KERNEL_OK")
</pallas_src>

<mosaic_0001>
module attributes {stable_mosaic.version = 11 : i64} {
  func.func @_bilateral_block_kernel(%arg0: i32, %arg1: i32, %arg2: memref<1x16x40xf32, #tpu.memory_space<vmem>>, %arg3: memref<1x16x40xf32, #tpu.memory_space<vmem>>, %arg4: memref<1x16x4xi32, #tpu.memory_space<vmem>>, %arg5: memref<40x32xf32, #tpu.memory_space<vmem>>, %arg6: memref<40x32xf32, #tpu.memory_space<vmem>>, %arg7: memref<1x32xf32, #tpu.memory_space<vmem>>, %arg8: memref<16x64xf32, #tpu.memory_space<vmem>>, %arg9: memref<1x64xf32, #tpu.memory_space<vmem>>, %arg10: memref<64x64xf32, #tpu.memory_space<vmem>>, %arg11: memref<1x64xf32, #tpu.memory_space<vmem>>, %arg12: memref<32x128xf32, #tpu.memory_space<vmem>>, %arg13: memref<3x32x128xf32, #tpu.memory_space<vmem>>, %arg14: memref<1x128xf32, #tpu.memory_space<vmem>>, %arg15: memref<32x128xf32, #tpu.memory_space<vmem>>, %arg16: memref<4x32x128xf32, #tpu.memory_space<vmem>>, %arg17: memref<4x64x128xf32, #tpu.memory_space<vmem>>, %arg18: memref<1x128xf32, #tpu.memory_space<vmem>>, %arg19: memref<1x128xf32, #tpu.memory_space<vmem>>, %arg20: memref<1x128xf32, #tpu.memory_space<vmem>>, %arg21: memref<32x32xf32, #tpu.memory_space<vmem>>, %arg22: memref<1x32xf32, #tpu.memory_space<vmem>>, %arg23: memref<32x64xf32, #tpu.memory_space<vmem>>, %arg24: memref<1x64xf32, #tpu.memory_space<vmem>>, %arg25: memref<64x512xf32, #tpu.memory_space<vmem>>, %arg26: memref<1x512xf32, #tpu.memory_space<vmem>>, %arg27: memref<1x16x128xf32, #tpu.memory_space<vmem>>, %arg28: memref<1x1x64xf32, #tpu.memory_space<vmem>>, %arg29: memref<1x1x512xf32, #tpu.memory_space<vmem>>) attributes {dimension_semantics = [#tpu.dimension_semantics<parallel>, #tpu.dimension_semantics<parallel>], iteration_bounds = array<i64: 2, 1>, scalar_prefetch = 0 : i64, scratch_operands = 0 : i64, tpu.core_type = #tpu.core_type<tc>, window_params = [{transform_indices = @transform_0, window_bounds = array<i64: 1, 16, 40>}, {transform_indices = @transform_1, window_bounds = array<i64: 1, 16, 40>}, {transform_indices = @transform_2, window_bounds = array<i64: 1, 16, 4>}, {pipeline_mode = #tpu.pipeline_mode<synchronous>, transform_indices = @transform_3, window_bounds = array<i64: 40, 32>}, {pipeline_mode = #tpu.pipeline_mode<synchronous>, transform_indices = @transform_4, window_bounds = array<i64: 40, 32>}, {pipeline_mode = #tpu.pipeline_mode<synchronous>, transform_indices = @transform_5, window_bounds = array<i64: 1, 32>}, {pipeline_mode = #tpu.pipeline_mode<synchronous>, transform_indices = @transform_6, window_bounds = array<i64: 16, 64>}, {pipeline_mode = #tpu.pipeline_mode<synchronous>, transform_indices = @transform_7, window_bounds = array<i64: 1, 64>}, {pipeline_mode = #tpu.pipeline_mode<synchronous>, transform_indices = @transform_8, window_bounds = array<i64: 64, 64>}, {pipeline_mode = #tpu.pipeline_mode<synchronous>, transform_indices = @transform_9, window_bounds = array<i64: 1, 64>}, {pipeline_mode = #tpu.pipeline_mode<synchronous>, transform_indices = @transform_10, window_bounds = array<i64: 32, 128>}, {pipeline_mode = #tpu.pipeline_mode<synchronous>, transform_indices = @transform_11, window_bounds = array<i64: 3, 32, 128>}, {pipeline_mode = #tpu.pipeline_mode<synchronous>, transform_indices = @transform_12, window_bounds = array<i64: 1, 128>}, {pipeline_mode = #tpu.pipeline_mode<synchronous>, transform_indices = @transform_13, window_bounds = array<i64: 32, 128>}, {pipeline_mode = #tpu.pipeline_mode<synchronous>, transform_indices = @transform_14, window_bounds = array<i64: 4, 32, 128>}, {pipeline_mode = #tpu.pipeline_mode<synchronous>, transform_indices = @transform_15, window_bounds = array<i64: 4, 64, 128>}, {pipeline_mode = #tpu.pipeline_mode<synchronous>, transform_indices = @transform_16, window_bounds = array<i64: 1, 128>}, {pipeline_mode = #tpu.pipeline_mode<synchronous>, transform_indices = @transform_17, window_bounds = array<i64: 1, 128>}, {pipeline_mode = #tpu.pipeline_mode<synchronous>, transform_indices = @transform_18, window_bounds = array<i64: 1, 128>}, {pipeline_mode = #tpu.pipeline_mode<synchronous>, transform_indices = @transform_19, window_bounds = array<i64: 32, 32>}, {pipeline_mode = #tpu.pipeline_mode<synchronous>, transform_indices = @transform_20, window_bounds = array<i64: 1, 32>}, {pipeline_mode = #tpu.pipeline_mode<synchronous>, transform_indices = @transform_21, window_bounds = array<i64: 32, 64>}, {pipeline_mode = #tpu.pipeline_mode<synchronous>, transform_indices = @transform_22, window_bounds = array<i64: 1, 64>}, {pipeline_mode = #tpu.pipeline_mode<synchronous>, transform_indices = @transform_23, window_bounds = array<i64: 64, 512>}, {pipeline_mode = #tpu.pipeline_mode<synchronous>, transform_indices = @transform_24, window_bounds = array<i64: 1, 512>}, {transform_indices = @transform_25, window_bounds = array<i64: 1, 16, 128>}, {transform_indices = @transform_26, window_bounds = array<i64: 1, 1, 64>}, {transform_indices = @transform_27, window_bounds = array<i64: 1, 1, 512>}]} {
    %c0 = arith.constant 0 : index
    %c0_0 = arith.constant 0 : index
    %c0_1 = arith.constant 0 : index
    %0 = vector.load %arg2[%c0, %c0_0, %c0_1] : memref<1x16x40xf32, #tpu.memory_space<vmem>>, vector<1x16x40xf32>
    %1 = vector.shape_cast %0 : vector<1x16x40xf32> to vector<16x40xf32>
    %c0_2 = arith.constant 0 : index
    %c0_3 = arith.constant 0 : index
    %c0_4 = arith.constant 0 : index
    %2 = vector.load %arg3[%c0_2, %c0_3, %c0_4] : memref<1x16x40xf32, #tpu.memory_space<vmem>>, vector<1x16x40xf32>
    %3 = vector.shape_cast %2 : vector<1x16x40xf32> to vector<16x40xf32>
    %c0_5 = arith.constant 0 : index
    %c0_6 = arith.constant 0 : index
    %c0_7 = arith.constant 0 : index
    %4 = vector.load %arg4[%c0_5, %c0_6, %c0_7] : memref<1x16x4xi32, #tpu.memory_space<vmem>>, vector<1x16x4xi32>
    %5 = vector.shape_cast %4 : vector<1x16x4xi32> to vector<16x4xi32>
    %6 = vector.extract_strided_slice %3 {offsets = [0, 0], sizes = [16, 32], strides = [1, 1]} : vector<16x40xf32> to vector<16x32xf32>
    %7 = tpu.iota {dimensions = array<i32: 1>} : vector<16x16xi32>
    %8 = vector.extract_strided_slice %5 {offsets = [0, 0], sizes = [16, 1], strides = [1, 1]} : vector<16x4xi32> to vector<16x1xi32>
    %9 = vector.broadcast %8 : vector<16x1xi32> to vector<16x16xi32>
    %10 = arith.cmpi eq, %7, %9 : vector<16x16xi32>
    %11 = arith.extui %10 : vector<16x16xi1> to vector<16x16xi32>
    %12 = arith.sitofp %11 : vector<16x16xi32> to vector<16x16xf32>
    %cst = arith.constant dense<0.000000e+00> : vector<16x40xf32>
    %13 = tpu.matmul %12, %1, %cst {dimension_numbers = #tpu.dot_dimension_numbers<[1], [0], [0], [1], [0, 0, 1, 1], [], []>} : vector<16x16xf32>, vector<16x40xf32>, vector<16x40xf32> -> vector<16x40xf32>
    %14 = arith.subf %13, %3 : vector<16x40xf32>
    %15 = vector.extract_strided_slice %5 {offsets = [0, 1], sizes = [16, 1], strides = [1, 1]} : vector<16x4xi32> to vector<16x1xi32>
    %16 = vector.broadcast %15 : vector<16x1xi32> to vector<16x16xi32>
    %17 = arith.cmpi eq, %7, %16 : vector<16x16xi32>
    %18 = arith.extui %17 : vector<16x16xi1> to vector<16x16xi32>
    %19 = arith.sitofp %18 : vector<16x16xi32> to vector<16x16xf32>
    %cst_8 = arith.constant dense<0.000000e+00> : vector<16x40xf32>
    %20 = tpu.matmul %19, %1, %cst_8 {dimension_numbers = #tpu.dot_dimension_numbers<[1], [0], [0], [1], [0, 0, 1, 1], [], []>} : vector<16x16xf32>, vector<16x40xf32>, vector<16x40xf32> -> vector<16x40xf32>
    %21 = arith.subf %20, %3 : vector<16x40xf32>
    %22 = vector.extract_strided_slice %5 {offsets = [0, 2], sizes = [16, 1], strides = [1, 1]} : vector<16x4xi32> to vector<16x1xi32>
    %23 = vector.broadcast %22 : vector<16x1xi32> to vector<16x16xi32>
    %24 = arith.cmpi eq, %7, %23 : vector<16x16xi32>
    %25 = arith.extui %24 : vector<16x16xi1> to vector<16x16xi32>
    %26 = arith.sitofp %25 : vector<16x16xi32> to vector<16x16xf32>
    %cst_9 = arith.constant dense<0.000000e+00> : vector<16x40xf32>
    %27 = tpu.matmul %26, %1, %cst_9 {dimension_numbers = #tpu.dot_dimension_numbers<[1], [0], [0], [1], [0, 0, 1, 1], [], []>} : vector<16x16xf32>, vector<16x40xf32>, vector<16x40xf32> -> vector<16x40xf32>
    %28 = arith.subf %27, %3 : vector<16x40xf32>
    %29 = vector.extract_strided_slice %5 {offsets = [0, 3], sizes = [16, 1], strides = [1, 1]} : vector<16x4xi32> to vector<16x1xi32>
    %30 = vector.broadcast %29 : vector<16x1xi32> to vector<16x16xi32>
    %31 = arith.cmpi eq, %7, %30 : vector<16x16xi32>
    %32 = arith.extui %31 : vector<16x16xi1> to vector<16x16xi32>
    %33 = arith.sitofp %32 : vector<16x16xi32> to vector<16x16xf32>
    %cst_10 = arith.constant dense<0.000000e+00> : vector<16x40xf32>
    %34 = tpu.matmul %33, %1, %cst_10 {dimension_numbers = #tpu.dot_dimension_numbers<[1], [0], [0], [1], [0, 0, 1, 1], [], []>} : vector<16x16xf32>, vector<16x40xf32>, vector<16x40xf32> -> vector<16x40xf32>
    %35 = arith.subf %34, %3 : vector<16x40xf32>
    %c0_11 = arith.constant 0 : index
    %c0_12 = arith.constant 0 : index
    %36 = vector.load %arg5[%c0_11, %c0_12] : memref<40x32xf32, #tpu.memory_space<vmem>>, vector<40x32xf32>
    %cst_13 = arith.constant dense<0.000000e+00> : vector<16x32xf32>
    %37 = tpu.matmul %3, %36, %cst_13 {dimension_numbers = #tpu.dot_dimension_numbers<[1], [0], [0], [1], [0, 0, 1, 1], [], []>} : vector<16x40xf32>, vector<40x32xf32>, vector<16x32xf32> -> vector<16x32xf32>
    %c0_14 = arith.constant 0 : index
    %c0_15 = arith.constant 0 : index
    %38 = vector.load %arg7[%c0_14, %c0_15] : memref<1x32xf32, #tpu.memory_space<vmem>>, vector<1x32xf32>
    %39 = vector.broadcast %38 : vector<1x32xf32> to vector<16x32xf32>
    %40 = arith.addf %37, %39 : vector<16x32xf32>
    %c0_16 = arith.constant 0 : index
    %c0_17 = arith.constant 0 : index
    %41 = vector.load %arg6[%c0_16, %c0_17] : memref<40x32xf32, #tpu.memory_space<vmem>>, vector<40x32xf32>
    %cst_18 = arith.constant dense<0.000000e+00> : vector<16x32xf32>
    %42 = tpu.matmul %14, %41, %cst_18 {dimension_numbers = #tpu.dot_dimension_numbers<[1], [0], [0], [1], [0, 0, 1, 1], [], []>} : vector<16x40xf32>, vector<40x32xf32>, vector<16x32xf32> -> vector<16x32xf32>
    %43 = arith.addf %40, %42 : vector<16x32xf32>
    %cst_19 = arith.constant 0.000000e+00 : f32
    %44 = vector.broadcast %cst_19 : f32 to vector<16x32xf32>
    %45 = arith.cmpf ogt, %43, %44 : vector<16x32xf32>
    %cst_20 = arith.constant 0.00999999977 : f32
    %46 = vector.broadcast %cst_20 : f32 to vector<16x32xf32>
    %47 = arith.mulf %46, %43 : vector<16x32xf32>
    %48 = arith.select %45, %43, %47 : vector<16x32xi1>, vector<16x32xf32>
    %49 = vector.extract_strided_slice %48 {offsets = [0, 0], sizes = [16, 16], strides = [1, 1]} : vector<16x32xf32> to vector<16x16xf32>
    %50 = vector.extract_strided_slice %48 {offsets = [0, 16], sizes = [16, 16], strides = [1, 1]} : vector<16x32xf32> to vector<16x16xf32>
    %51 = arith.mulf %49, %50 : vector<16x16xf32>
    %c0_21 = arith.constant 0 : index
    %c0_22 = arith.constant 0 : index
    %52 = vector.load %arg6[%c0_21, %c0_22] : memref<40x32xf32, #tpu.memory_space<vmem>>, vector<40x32xf32>
    %cst_23 = arith.constant dense<0.000000e+00> : vector<16x32xf32>
    %53 = tpu.matmul %21, %52, %cst_23 {dimension_numbers = #tpu.dot_dimension_numbers<[1], [0], [0], [1], [0, 0, 1, 1], [], []>} : vector<16x40xf32>, vector<40x32xf32>, vector<16x32xf32> -> vector<16x32xf32>
    %54 = arith.addf %40, %53 : vector<16x32xf32>
    %cst_24 = arith.constant 0.000000e+00 : f32
    %55 = vector.broadcast %cst_24 : f32 to vector<16x32xf32>
    %56 = arith.cmpf ogt, %54, %55 : vector<16x32xf32>
    %cst_25 = arith.constant 0.00999999977 : f32
    %57 = vector.broadcast %cst_25 : f32 to vector<16x32xf32>
    %58 = arith.mulf %57, %54 : vector<16x32xf32>
    %59 = arith.select %56, %54, %58 : vector<16x32xi1>, vector<16x32xf32>
    %60 = vector.extract_strided_slice %59 {offsets = [0, 0], sizes = [16, 16], strides = [1, 1]} : vector<16x32xf32> to vector<16x16xf32>
    %61 = vector.extract_strided_slice %59 {offsets = [0, 16], sizes = [16, 16], strides = [1, 1]} : vector<16x32xf32> to vector<16x16xf32>
    %62 = arith.mulf %60, %61 : vector<16x16xf32>
    %c0_26 = arith.constant 0 : index
    %c0_27 = arith.constant 0 : index
    %63 = vector.load %arg6[%c0_26, %c0_27] : memref<40x32xf32, #tpu.memory_space<vmem>>, vector<40x32xf32>
    %cst_28 = arith.constant dense<0.000000e+00> : vector<16x32xf32>
    %64 = tpu.matmul %28, %63, %cst_28 {dimension_numbers = #tpu.dot_dimension_numbers<[1], [0], [0], [1], [0, 0, 1, 1], [], []>} : vector<16x40xf32>, vector<40x32xf32>, vector<16x32xf32> -> vector<16x32xf32>
    %65 = arith.addf %40, %64 : vector<16x32xf32>
    %cst_29 = arith.constant 0.000000e+00 : f32
    %66 = vector.broadcast %cst_29 : f32 to vector<16x32xf32>
    %67 = arith.cmpf ogt, %65, %66 : vector<16x32xf32>
    %cst_30 = arith.constant 0.00999999977 : f32
    %68 = vector.broadcast %cst_30 : f32 to vector<16x32xf32>
    %69 = arith.mulf %68, %65 : vector<16x32xf32>
    %70 = arith.select %67, %65, %69 : vector<16x32xi1>, vector<16x32xf32>
    %71 = vector.extract_strided_slice %70 {offsets = [0, 0], sizes = [16, 16], strides = [1, 1]} : vector<16x32xf32> to vector<16x16xf32>
    %72 = vector.extract_strided_slice %70 {offsets = [0, 16], sizes = [16, 16], strides = [1, 1]} : vector<16x32xf32> to vector<16x16xf32>
    %73 = arith.mulf %71, %72 : vector<16x16xf32>
    %c0_31 = arith.constant 0 : index
    %c0_32 = arith.constant 0 : index
    %74 = vector.load %arg6[%c0_31, %c0_32] : memref<40x32xf32, #tpu.memory_space<vmem>>, vector<40x32xf32>
    %cst_33 = arith.constant dense<0.000000e+00> : vector<16x32xf32>
    %75 = tpu.matmul %35, %74, %cst_33 {dimension_numbers = #tpu.dot_dimension_numbers<[1], [0], [0], [1], [0, 0, 1, 1], [], []>} : vector<16x40xf32>, vector<40x32xf32>, vector<16x32xf32> -> vector<16x32xf32>
    %76 = arith.addf %40, %75 : vector<16x32xf32>
    %cst_34 = arith.constant 0.000000e+00 : f32
    %77 = vector.broadcast %cst_34 : f32 to vector<16x32xf32>
    %78 = arith.cmpf ogt, %76, %77 : vector<16x32xf32>
    %cst_35 = arith.constant 0.00999999977 : f32
    %79 = vector.broadcast %cst_35 : f32 to vector<16x32xf32>
    %80 = arith.mulf %79, %76 : vector<16x32xf32>
    %81 = arith.select %78, %76, %80 : vector<16x32xi1>, vector<16x32xf32>
    %82 = vector.extract_strided_slice %81 {offsets = [0, 0], sizes = [16, 16], strides = [1, 1]} : vector<16x32xf32> to vector<16x16xf32>
    %83 = vector.extract_strided_slice %81 {offsets = [0, 16], sizes = [16, 16], strides = [1, 1]} : vector<16x32xf32> to vector<16x16xf32>
    %84 = arith.mulf %82, %83 : vector<16x16xf32>
    %85 = tpu.concatenate %51, %62, %73, %84 in 0 : vector<16x16xf32>, vector<16x16xf32>, vector<16x16xf32>, vector<16x16xf32> -> vector<64x16xf32>
    %c0_36 = arith.constant 0 : index
    %c0_37 = arith.constant 0 : index
    %86 = vector.load %arg8[%c0_36, %c0_37] : memref<16x64xf32, #tpu.memory_space<vmem>>, vector<16x64xf32>
    %cst_38 = arith.constant dense<0.000000e+00> : vector<64x64xf32>
    %87 = tpu.matmul %85, %86, %cst_38 {dimension_numbers = #tpu.dot_dimension_numbers<[1], [0], [0], [1], [0, 0, 1, 1], [], []>} : vector<64x16xf32>, vector<16x64xf32>, vector<64x64xf32> -> vector<64x64xf32>
    %c0_39 = arith.constant 0 : index
    %c0_40 = arith.constant 0 : index
    %88 = vector.load %arg9[%c0_39, %c0_40] : memref<1x64xf32, #tpu.memory_space<vmem>>, vector<1x64xf32>
    %89 = vector.broadcast %88 : vector<1x64xf32> to vector<64x64xf32>
    %90 = arith.addf %87, %89 : vector<64x64xf32>
    %cst_41 = arith.constant 0.000000e+00 : f32
    %91 = vector.broadcast %cst_41 : f32 to vector<64x64xf32>
    %92 = arith.cmpf ogt, %90, %91 : vector<64x64xf32>
    %cst_42 = arith.constant 0.00999999977 : f32
    %93 = vector.broadcast %cst_42 : f32 to vector<64x64xf32>
    %94 = arith.mulf %93, %90 : vector<64x64xf32>
    %95 = arith.select %92, %90, %94 : vector<64x64xi1>, vector<64x64xf32>
    %c0_43 = arith.constant 0 : index
    %c0_44 = arith.constant 0 : index
    %96 = vector.load %arg10[%c0_43, %c0_44] : memref<64x64xf32, #tpu.memory_space<vmem>>, vector<64x64xf32>
    %cst_45 = arith.constant dense<0.000000e+00> : vector<64x64xf32>
    %97 = tpu.matmul %95, %96, %cst_45 {dimension_numbers = #tpu.dot_dimension_numbers<[1], [0], [0], [1], [0, 0, 1, 1], [], []>} : vector<64x64xf32>, vector<64x64xf32>, vector<64x64xf32> -> vector<64x64xf32>
    %c0_46 = arith.constant 0 : index
    %c0_47 = arith.constant 0 : index
    %98 = vector.load %arg11[%c0_46, %c0_47] : memref<1x64xf32, #tpu.memory_space<vmem>>, vector<1x64xf32>
    %99 = vector.broadcast %98 : vector<1x64xf32> to vector<64x64xf32>
    %100 = arith.addf %97, %99 : vector<64x64xf32>
    %cst_48 = arith.constant 0.000000e+00 : f32
    %101 = vector.broadcast %cst_48 : f32 to vector<64x64xf32>
    %102 = arith.cmpf ogt, %100, %101 : vector<64x64xf32>
    %cst_49 = arith.constant 0.00999999977 : f32
    %103 = vector.broadcast %cst_49 : f32 to vector<64x64xf32>
    %104 = arith.mulf %103, %100 : vector<64x64xf32>
    %105 = arith.select %102, %100, %104 : vector<64x64xi1>, vector<64x64xf32>
    %106 = vector.extract_strided_slice %105 {offsets = [0, 0], sizes = [16, 64], strides = [1, 1]} : vector<64x64xf32> to vector<16x64xf32>
    %107 = vector.extract_strided_slice %105 {offsets = [16, 0], sizes = [16, 64], strides = [1, 1]} : vector<64x64xf32> to vector<16x64xf32>
    %108 = vector.extract_strided_slice %105 {offsets = [32, 0], sizes = [16, 64], strides = [1, 1]} : vector<64x64xf32> to vector<16x64xf32>
    %109 = vector.extract_strided_slice %105 {offsets = [48, 0], sizes = [16, 64], strides = [1, 1]} : vector<64x64xf32> to vector<16x64xf32>
    %110 = arith.maximumf %106, %107 : vector<16x64xf32>
    %111 = arith.maximumf %110, %108 : vector<16x64xf32>
    %112 = arith.maximumf %111, %109 : vector<16x64xf32>
    %113 = arith.subf %106, %112 : vector<16x64xf32>
    %114 = math.exp %113 : vector<16x64xf32>
    %115 = arith.subf %107, %112 : vector<16x64xf32>
    %116 = math.exp %115 : vector<16x64xf32>
    %117 = arith.subf %108, %112 : vector<16x64xf32>
    %118 = math.exp %117 : vector<16x64xf32>
    %119 = arith.subf %109, %112 : vector<16x64xf32>
    %120 = math.exp %119 : vector<16x64xf32>
    %121 = arith.addf %114, %116 : vector<16x64xf32>
    %122 = arith.addf %121, %118 : vector<16x64xf32>
    %123 = arith.addf %122, %120 : vector<16x64xf32>
    %cst_50 = arith.constant 1.000000e+00 : f32
    %124 = vector.broadcast %cst_50 : f32 to vector<16x64xf32>
    %125 = arith.divf %124, %123 : vector<16x64xf32>
    %126 = arith.mulf %114, %125 : vector<16x64xf32>
    %127 = arith.mulf %116, %125 : vector<16x64xf32>
    %128 = arith.mulf %118, %125 : vector<16x64xf32>
    %129 = arith.mulf %120, %125 : vector<16x64xf32>
    %130 = vector.extract_strided_slice %14 {offsets = [0, 0], sizes = [16, 32], strides = [1, 1]} : vector<16x40xf32> to vector<16x32xf32>
    %131 = vector.extract_strided_slice %21 {offsets = [0, 0], sizes = [16, 32], strides = [1, 1]} : vector<16x40xf32> to vector<16x32xf32>
    %132 = vector.extract_strided_slice %28 {offsets = [0, 0], sizes = [16, 32], strides = [1, 1]} : vector<16x40xf32> to vector<16x32xf32>
    %133 = vector.extract_strided_slice %35 {offsets = [0, 0], sizes = [16, 32], strides = [1, 1]} : vector<16x40xf32> to vector<16x32xf32>
    %c0_51 = arith.constant 0 : index
    %c0_52 = arith.constant 0 : index
    %134 = vector.load %arg15[%c0_51, %c0_52] : memref<32x128xf32, #tpu.memory_space<vmem>>, vector<32x128xf32>
    %cst_53 = arith.constant dense<0.000000e+00> : vector<16x128xf32>
    %135 = tpu.matmul %6, %134, %cst_53 {dimension_numbers = #tpu.dot_dimension_numbers<[1], [0], [0], [1], [0, 0, 1, 1], [], []>} : vector<16x32xf32>, vector<32x128xf32>, vector<16x128xf32> -> vector<16x128xf32>
    %c0_54 = arith.constant 0 : index
    %c0_55 = arith.constant 0 : index
    %136 = vector.load %arg18[%c0_54, %c0_55] : memref<1x128xf32, #tpu.memory_space<vmem>>, vector<1x128xf32>
    %137 = vector.broadcast %136 : vector<1x128xf32> to vector<16x128xf32>
    %138 = arith.addf %135, %137 : vector<16x128xf32>
    %c0_56 = arith.constant 0 : index
    %c0_57 = arith.constant 0 : index
    %c0_58 = arith.constant 0 : index
    %139 = vector.load %arg16[%c0_56, %c0_57, %c0_58] : memref<4x32x128xf32, #tpu.memory_space<vmem>>, vector<1x32x128xf32>
    %140 = vector.shape_cast %139 : vector<1x32x128xf32> to vector<32x128xf32>
    %cst_59 = arith.constant dense<0.000000e+00> : vector<16x128xf32>
    %141 = tpu.matmul %130, %140, %cst_59 {dimension_numbers = #tpu.dot_dimension_numbers<[1], [0], [0], [1], [0, 0, 1, 1], [], []>} : vector<16x32xf32>, vector<32x128xf32>, vector<16x128xf32> -> vector<16x128xf32>
    %142 = arith.addf %138, %141 : vector<16x128xf32>
    %c1 = arith.constant 1 : index
    %c0_60 = arith.constant 0 : index
    %c0_61 = arith.constant 0 : index
    %143 = vector.load %arg16[%c1, %c0_60, %c0_61] : memref<4x32x128xf32, #tpu.memory_space<vmem>>, vector<1x32x128xf32>
    %144 = vector.shape_cast %143 : vector<1x32x128xf32> to vector<32x128xf32>
    %cst_62 = arith.constant dense<0.000000e+00> : vector<16x128xf32>
    %145 = tpu.matmul %131, %144, %cst_62 {dimension_numbers = #tpu.dot_dimension_numbers<[1], [0], [0], [1], [0, 0, 1, 1], [], []>} : vector<16x32xf32>, vector<32x128xf32>, vector<16x128xf32> -> vector<16x128xf32>
    %146 = arith.addf %142, %145 : vector<16x128xf32>
    %c2 = arith.constant 2 : index
    %c0_63 = arith.constant 0 : index
    %c0_64 = arith.constant 0 : index
    %147 = vector.load %arg16[%c2, %c0_63, %c0_64] : memref<4x32x128xf32, #tpu.memory_space<vmem>>, vector<1x32x128xf32>
    %148 = vector.shape_cast %147 : vector<1x32x128xf32> to vector<32x128xf32>
    %cst_65 = arith.constant dense<0.000000e+00> : vector<16x128xf32>
    %149 = tpu.matmul %132, %148, %cst_65 {dimension_numbers = #tpu.dot_dimension_numbers<[1], [0], [0], [1], [0, 0, 1, 1], [], []>} : vector<16x32xf32>, vector<32x128xf32>, vector<16x128xf32> -> vector<16x128xf32>
    %150 = arith.addf %146, %149 : vector<16x128xf32>
    %c3 = arith.constant 3 : index
    %c0_66 = arith.constant 0 : index
    %c0_67 = arith.constant 0 : index
    %151 = vector.load %arg16[%c3, %c0_66, %c0_67] : memref<4x32x128xf32, #tpu.memory_space<vmem>>, vector<1x32x128xf32>
    %152 = vector.shape_cast %151 : vector<1x32x128xf32> to vector<32x128xf32>
    %cst_68 = arith.constant dense<0.000000e+00> : vector<16x128xf32>
    %153 = tpu.matmul %133, %152, %cst_68 {dimension_numbers = #tpu.dot_dimension_numbers<[1], [0], [0], [1], [0, 0, 1, 1], [], []>} : vector<16x32xf32>, vector<32x128xf32>, vector<16x128xf32> -> vector<16x128xf32>
    %154 = arith.addf %150, %153 : vector<16x128xf32>
    %c0_69 = arith.constant 0 : index
    %c0_70 = arith.constant 0 : index
    %155 = vector.load %arg12[%c0_69, %c0_70] : memref<32x128xf32, #tpu.memory_space<vmem>>, vector<32x128xf32>
    %cst_71 = arith.constant dense<0.000000e+00> : vector<16x128xf32>
    %156 = tpu.matmul %6, %155, %cst_71 {dimension_numbers = #tpu.dot_dimension_numbers<[1], [0], [0], [1], [0, 0, 1, 1], [], []>} : vector<16x32xf32>, vector<32x128xf32>, vector<16x128xf32> -> vector<16x128xf32>
    %c0_72 = arith.constant 0 : index
    %c0_73 = arith.constant 0 : index
    %157 = vector.load %arg14[%c0_72, %c0_73] : memref<1x128xf32, #tpu.memory_space<vmem>>, vector<1x128xf32>
    %158 = vector.broadcast %157 : vector<1x128xf32> to vector<16x128xf32>
    %159 = arith.addf %156, %158 : vector<16x128xf32>
    %c0_74 = arith.constant 0 : index
    %c0_75 = arith.constant 0 : index
    %c0_76 = arith.constant 0 : index
    %160 = vector.load %arg13[%c0_74, %c0_75, %c0_76] : memref<3x32x128xf32, #tpu.memory_space<vmem>>, vector<1x32x128xf32>
    %161 = vector.shape_cast %160 : vector<1x32x128xf32> to vector<32x128xf32>
    %cst_77 = arith.constant dense<0.000000e+00> : vector<16x128xf32>
    %162 = tpu.matmul %130, %161, %cst_77 {dimension_numbers = #tpu.dot_dimension_numbers<[1], [0], [0], [1], [0, 0, 1, 1], [], []>} : vector<16x32xf32>, vector<32x128xf32>, vector<16x128xf32> -> vector<16x128xf32>
    %163 = arith.addf %159, %162 : vector<16x128xf32>
    %c1_78 = arith.constant 1 : index
    %c0_79 = arith.constant 0 : index
    %c0_80 = arith.constant 0 : index
    %164 = vector.load %arg13[%c1_78, %c0_79, %c0_80] : memref<3x32x128xf32, #tpu.memory_space<vmem>>, vector<1x32x128xf32>
    %165 = vector.shape_cast %164 : vector<1x32x128xf32> to vector<32x128xf32>
    %cst_81 = arith.constant dense<0.000000e+00> : vector<16x128xf32>
    %166 = tpu.matmul %131, %165, %cst_81 {dimension_numbers = #tpu.dot_dimension_numbers<[1], [0], [0], [1], [0, 0, 1, 1], [], []>} : vector<16x32xf32>, vector<32x128xf32>, vector<16x128xf32> -> vector<16x128xf32>
    %167 = arith.addf %163, %166 : vector<16x128xf32>
    %c2_82 = arith.constant 2 : index
    %c0_83 = arith.constant 0 : index
    %c0_84 = arith.constant 0 : index
    %168 = vector.load %arg13[%c2_82, %c0_83, %c0_84] : memref<3x32x128xf32, #tpu.memory_space<vmem>>, vector<1x32x128xf32>
    %169 = vector.shape_cast %168 : vector<1x32x128xf32> to vector<32x128xf32>
    %cst_85 = arith.constant dense<0.000000e+00> : vector<16x128xf32>
    %170 = tpu.matmul %132, %169, %cst_85 {dimension_numbers = #tpu.dot_dimension_numbers<[1], [0], [0], [1], [0, 0, 1, 1], [], []>} : vector<16x32xf32>, vector<32x128xf32>, vector<16x128xf32> -> vector<16x128xf32>
    %171 = arith.addf %167, %170 : vector<16x128xf32>
    %cst_86 = arith.constant 0.000000e+00 : f32
    %172 = vector.broadcast %cst_86 : f32 to vector<16x128xf32>
    %173 = arith.cmpf ogt, %171, %172 : vector<16x128xf32>
    %cst_87 = arith.constant 0.00999999977 : f32
    %174 = vector.broadcast %cst_87 : f32 to vector<16x128xf32>
    %175 = arith.mulf %174, %171 : vector<16x128xf32>
    %176 = arith.select %173, %171, %175 : vector<16x128xi1>, vector<16x128xf32>
    %177 = vector.extract_strided_slice %176 {offsets = [0, 0], sizes = [16, 64], strides = [1, 1]} : vector<16x128xf32> to vector<16x64xf32>
    %178 = arith.mulf %177, %126 : vector<16x64xf32>
    %179 = vector.extract_strided_slice %176 {offsets = [0, 64], sizes = [16, 64], strides = [1, 1]} : vector<16x128xf32> to vector<16x64xf32>
    %180 = arith.mulf %179, %128 : vector<16x64xf32>
    %c0_88 = arith.constant 0 : index
    %c0_89 = arith.constant 0 : index
    %c0_90 = arith.constant 0 : index
    %181 = vector.load %arg17[%c0_88, %c0_89, %c0_90] : memref<4x64x128xf32, #tpu.memory_space<vmem>>, vector<1x64x128xf32>
    %182 = vector.shape_cast %181 : vector<1x64x128xf32> to vector<64x128xf32>
    %cst_91 = arith.constant dense<0.000000e+00> : vector<16x128xf32>
    %183 = tpu.matmul %178, %182, %cst_91 {dimension_numbers = #tpu.dot_dimension_numbers<[1], [0], [0], [1], [0, 0, 1, 1], [], []>} : vector<16x64xf32>, vector<64x128xf32>, vector<16x128xf32> -> vector<16x128xf32>
    %184 = arith.addf %154, %183 : vector<16x128xf32>
    %c2_92 = arith.constant 2 : index
    %c0_93 = arith.constant 0 : index
    %c0_94 = arith.constant 0 : index
    %185 = vector.load %arg17[%c2_92, %c0_93, %c0_94] : memref<4x64x128xf32, #tpu.memory_space<vmem>>, vector<1x64x128xf32>
    %186 = vector.shape_cast %185 : vector<1x64x128xf32> to vector<64x128xf32>
    %cst_95 = arith.constant dense<0.000000e+00> : vector<16x128xf32>
    %187 = tpu.matmul %180, %186, %cst_95 {dimension_numbers = #tpu.dot_dimension_numbers<[1], [0], [0], [1], [0, 0, 1, 1], [], []>} : vector<16x64xf32>, vector<64x128xf32>, vector<16x128xf32> -> vector<16x128xf32>
    %188 = arith.addf %184, %187 : vector<16x128xf32>
    %c0_96 = arith.constant 0 : index
    %c0_97 = arith.constant 0 : index
    %c0_98 = arith.constant 0 : index
    %189 = vector.load %arg13[%c0_96, %c0_97, %c0_98] : memref<3x32x128xf32, #tpu.memory_space<vmem>>, vector<1x32x128xf32>
    %190 = vector.shape_cast %189 : vector<1x32x128xf32> to vector<32x128xf32>
    %cst_99 = arith.constant dense<0.000000e+00> : vector<16x128xf32>
    %191 = tpu.matmul %131, %190, %cst_99 {dimension_numbers = #tpu.dot_dimension_numbers<[1], [0], [0], [1], [0, 0, 1, 1], [], []>} : vector<16x32xf32>, vector<32x128xf32>, vector<16x128xf32> -> vector<16x128xf32>
    %192 = arith.addf %159, %191 : vector<16x128xf32>
    %c1_100 = arith.constant 1 : index
    %c0_101 = arith.constant 0 : index
    %c0_102 = arith.constant 0 : index
    %193 = vector.load %arg13[%c1_100, %c0_101, %c0_102] : memref<3x32x128xf32, #tpu.memory_space<vmem>>, vector<1x32x128xf32>
    %194 = vector.shape_cast %193 : vector<1x32x128xf32> to vector<32x128xf32>
    %cst_103 = arith.constant dense<0.000000e+00> : vector<16x128xf32>
    %195 = tpu.matmul %132, %194, %cst_103 {dimension_numbers = #tpu.dot_dimension_numbers<[1], [0], [0], [1], [0, 0, 1, 1], [], []>} : vector<16x32xf32>, vector<32x128xf32>, vector<16x128xf32> -> vector<16x128xf32>
    %196 = arith.addf %192, %195 : vector<16x128xf32>
    %c2_104 = arith.constant 2 : index
    %c0_105 = arith.constant 0 : index
    %c0_106 = arith.constant 0 : index
    %197 = vector.load %arg13[%c2_104, %c0_105, %c0_106] : memref<3x32x128xf32, #tpu.memory_space<vmem>>, vector<1x32x128xf32>
    %198 = vector.shape_cast %197 : vector<1x32x128xf32> to vector<32x128xf32>
    %cst_107 = arith.constant dense<0.000000e+00> : vector<16x128xf32>
    %199 = tpu.matmul %133, %198, %cst_107 {dimension_numbers = #tpu.dot_dimension_numbers<[1], [0], [0], [1], [0, 0, 1, 1], [], []>} : vector<16x32xf32>, vector<32x128xf32>, vector<16x128xf32> -> vector<16x128xf32>
    %200 = arith.addf %196, %199 : vector<16x128xf32>
    %cst_108 = arith.constant 0.000000e+00 : f32
    %201 = vector.broadcast %cst_108 : f32 to vector<16x128xf32>
    %202 = arith.cmpf ogt, %200, %201 : vector<16x128xf32>
    %cst_109 = arith.constant 0.00999999977 : f32
    %203 = vector.broadcast %cst_109 : f32 to vector<16x128xf32>
    %204 = arith.mulf %203, %200 : vector<16x128xf32>
    %205 = arith.select %202, %200, %204 : vector<16x128xi1>, vector<16x128xf32>
    %206 = vector.extract_strided_slice %205 {offsets = [0, 0], sizes = [16, 64], strides = [1, 1]} : vector<16x128xf32> to vector<16x64xf32>
    %207 = arith.mulf %206, %127 : vector<16x64xf32>
    %208 = vector.extract_strided_slice %205 {offsets = [0, 64], sizes = [16, 64], strides = [1, 1]} : vector<16x128xf32> to vector<16x64xf32>
    %209 = arith.mulf %208, %129 : vector<16x64xf32>
    %c1_110 = arith.constant 1 : index
    %c0_111 = arith.constant 0 : index
    %c0_112 = arith.constant 0 : index
    %210 = vector.load %arg17[%c1_110, %c0_111, %c0_112] : memref<4x64x128xf32, #tpu.memory_space<vmem>>, vector<1x64x128xf32>
    %211 = vector.shape_cast %210 : vector<1x64x128xf32> to vector<64x128xf32>
    %cst_113 = arith.constant dense<0.000000e+00> : vector<16x128xf32>
    %212 = tpu.matmul %207, %211, %cst_113 {dimension_numbers = #tpu.dot_dimension_numbers<[1], [0], [0], [1], [0, 0, 1, 1], [], []>} : vector<16x64xf32>, vector<64x128xf32>, vector<16x128xf32> -> vector<16x128xf32>
    %213 = arith.addf %188, %212 : vector<16x128xf32>
    %c3_114 = arith.constant 3 : index
    %c0_115 = arith.constant 0 : index
    %c0_116 = arith.constant 0 : index
    %214 = vector.load %arg17[%c3_114, %c0_115, %c0_116] : memref<4x64x128xf32, #tpu.memory_space<vmem>>, vector<1x64x128xf32>
    %215 = vector.shape_cast %214 : vector<1x64x128xf32> to vector<64x128xf32>
    %cst_117 = arith.constant dense<0.000000e+00> : vector<16x128xf32>
    %216 = tpu.matmul %209, %215, %cst_117 {dimension_numbers = #tpu.dot_dimension_numbers<[1], [0], [0], [1], [0, 0, 1, 1], [], []>} : vector<16x64xf32>, vector<64x128xf32>, vector<16x128xf32> -> vector<16x128xf32>
    %217 = arith.addf %213, %216 : vector<16x128xf32>
    %cst_118 = arith.constant 0.000000e+00 : f32
    %218 = vector.broadcast %cst_118 : f32 to vector<16x128xf32>
    %219 = arith.maximumf %217, %218 : vector<16x128xf32>
    %c0_119 = arith.constant 0 : index
    %c0_120 = arith.constant 0 : index
    %220 = vector.load %arg19[%c0_119, %c0_120] : memref<1x128xf32, #tpu.memory_space<vmem>>, vector<1x128xf32>
    %221 = vector.broadcast %220 : vector<1x128xf32> to vector<16x128xf32>
    %222 = arith.mulf %219, %221 : vector<16x128xf32>
    %c0_121 = arith.constant 0 : index
    %c0_122 = arith.constant 0 : index
    %223 = vector.load %arg20[%c0_121, %c0_122] : memref<1x128xf32, #tpu.memory_space<vmem>>, vector<1x128xf32>
    %224 = vector.broadcast %223 : vector<1x128xf32> to vector<16x128xf32>
    %225 = arith.addf %222, %224 : vector<16x128xf32>
    %cst_123 = arith.constant 0.000000e+00 : f32
    %226 = vector.broadcast %cst_123 : f32 to vector<16x128xf32>
    %227 = arith.cmpf ogt, %225, %226 : vector<16x128xf32>
    %cst_124 = arith.constant 0.00999999977 : f32
    %228 = vector.broadcast %cst_124 : f32 to vector<16x128xf32>
    %229 = arith.mulf %228, %225 : vector<16x128xf32>
    %230 = arith.select %227, %225, %229 : vector<16x128xi1>, vector<16x128xf32>
    %c0_125 = arith.constant 0 : index
    %c0_126 = arith.constant 0 : index
    %c0_127 = arith.constant 0 : index
    %231 = vector.load %arg27[%c0_125, %c0_126, %c0_127] : memref<1x16x128xf32, #tpu.memory_space<vmem>>, vector<1x16x128xf32>
    %232 = vector.shape_cast %231 : vector<1x16x128xf32> to vector<16x128xf32>
    %233 = vector.shape_cast %230 : vector<16x128xf32> to vector<1x16x128xf32>
    tpu.vector_store %arg27[%c0_125, %c0_126, %c0_127], %233 {strides = array<i32>} : memref<1x16x128xf32, #tpu.memory_space<vmem>>, vector<1x16x128xf32>,
    %234 = vector.extract_strided_slice %1 {offsets = [0, 0], sizes = [16, 32], strides = [1, 1]} : vector<16x40xf32> to vector<16x32xf32>
    %cst_128 = arith.constant dense<0xFF800000> : vector<32xf32>
    %235 = vector.multi_reduction <maximumf>, %234, %cst_128 [0] : vector<16x32xf32> to vector<32xf32>
    %236 = vector.shape_cast %235 : vector<32xf32> to vector<1x32xf32>
    %c0_129 = arith.constant 0 : index
    %c0_130 = arith.constant 0 : index
    %237 = vector.load %arg21[%c0_129, %c0_130] : memref<32x32xf32, #tpu.memory_space<vmem>>, vector<32x32xf32>
    %cst_131 = arith.constant dense<0.000000e+00> : vector<1x32xf32>
    %238 = tpu.matmul %236, %237, %cst_131 {dimension_numbers = #tpu.dot_dimension_numbers<[1], [0], [0], [1], [0, 0, 1, 1], [], []>} : vector<1x32xf32>, vector<32x32xf32>, vector<1x32xf32> -> vector<1x32xf32>
    %c0_132 = arith.constant 0 : index
    %c0_133 = arith.constant 0 : index
    %239 = vector.load %arg22[%c0_132, %c0_133] : memref<1x32xf32, #tpu.memory_space<vmem>>, vector<1x32xf32>
    %240 = arith.addf %238, %239 : vector<1x32xf32>
    %cst_134 = arith.constant 0.000000e+00 : f32
    %241 = vector.broadcast %cst_134 : f32 to vector<1x32xf32>
    %242 = arith.cmpf ogt, %240, %241 : vector<1x32xf32>
    %cst_135 = arith.constant 0.00999999977 : f32
    %243 = vector.broadcast %cst_135 : f32 to vector<1x32xf32>
    %244 = arith.mulf %243, %240 : vector<1x32xf32>
    %245 = arith.select %242, %240, %244 : vector<1x32xi1>, vector<1x32xf32>
    %c0_136 = arith.constant 0 : index
    %c0_137 = arith.constant 0 : index
    %246 = vector.load %arg23[%c0_136, %c0_137] : memref<32x64xf32, #tpu.memory_space<vmem>>, vector<32x64xf32>
    %cst_138 = arith.constant dense<0.000000e+00> : vector<1x64xf32>
    %247 = tpu.matmul %245, %246, %cst_138 {dimension_numbers = #tpu.dot_dimension_numbers<[1], [0], [0], [1], [0, 0, 1, 1], [], []>} : vector<1x32xf32>, vector<32x64xf32>, vector<1x64xf32> -> vector<1x64xf32>
    %c0_139 = arith.constant 0 : index
    %c0_140 = arith.constant 0 : index
    %248 = vector.load %arg24[%c0_139, %c0_140] : memref<1x64xf32, #tpu.memory_space<vmem>>, vector<1x64xf32>
    %249 = arith.addf %247, %248 : vector<1x64xf32>
    %cst_141 = arith.constant 0.000000e+00 : f32
    %250 = vector.broadcast %cst_141 : f32 to vector<1x64xf32>
    %251 = arith.cmpf ogt, %249, %250 : vector<1x64xf32>
    %cst_142 = arith.constant 0.00999999977 : f32
    %252 = vector.broadcast %cst_142 : f32 to vector<1x64xf32>
    %253 = arith.mulf %252, %249 : vector<1x64xf32>
    %254 = arith.select %251, %249, %253 : vector<1x64xi1>, vector<1x64xf32>
    %c0_143 = arith.constant 0 : index
    %c0_144 = arith.constant 0 : index
    %255 = vector.load %arg25[%c0_143, %c0_144] : memref<64x512xf32, #tpu.memory_space<vmem>>, vector<64x512xf32>
    %cst_145 = arith.constant dense<0.000000e+00> : vector<1x512xf32>
    %256 = tpu.matmul %254, %255, %cst_145 {dimension_numbers = #tpu.dot_dimension_numbers<[1], [0], [0], [1], [0, 0, 1, 1], [], []>} : vector<1x64xf32>, vector<64x512xf32>, vector<1x512xf32> -> vector<1x512xf32>
    %c0_146 = arith.constant 0 : index
    %c0_147 = arith.constant 0 : index
    %257 = vector.load %arg26[%c0_146, %c0_147] : memref<1x512xf32, #tpu.memory_space<vmem>>, vector<1x512xf32>
    %258 = arith.addf %256, %257 : vector<1x512xf32>
    %cst_148 = arith.constant 0.000000e+00 : f32
    %259 = vector.broadcast %cst_148 : f32 to vector<1x512xf32>
    %260 = arith.cmpf ogt, %258, %259 : vector<1x512xf32>
    %cst_149 = arith.constant 0.00999999977 : f32
    %261 = vector.broadcast %cst_149 : f32 to vector<1x512xf32>
    %262 = arith.mulf %261, %258 : vector<1x512xf32>
    %263 = arith.select %260, %258, %262 : vector<1x512xi1>, vector<1x512xf32>
    %c0_150 = arith.constant 0 : index
    %c0_151 = arith.constant 0 : index
    %c0_152 = arith.constant 0 : index
    %264 = vector.load %arg28[%c0_150, %c0_151, %c0_152] : memref<1x1x64xf32, #tpu.memory_space<vmem>>, vector<1x1x64xf32>
    %265 = vector.shape_cast %264 : vector<1x1x64xf32> to vector<1x64xf32>
    %266 = vector.shape_cast %254 : vector<1x64xf32> to vector<1x1x64xf32>
    tpu.vector_store %arg28[%c0_150, %c0_151, %c0_152], %266 {strides = array<i32>} : memref<1x1x64xf32, #tpu.memory_space<vmem>>, vector<1x1x64xf32>,
    %c0_153 = arith.constant 0 : index
    %c0_154 = arith.constant 0 : index
    %c0_155 = arith.constant 0 : index
    %267 = vector.load %arg29[%c0_153, %c0_154, %c0_155] : memref<1x1x512xf32, #tpu.memory_space<vmem>>, vector<1x1x512xf32>
    %268 = vector.shape_cast %267 : vector<1x1x512xf32> to vector<1x512xf32>
    %269 = vector.shape_cast %263 : vector<1x512xf32> to vector<1x1x512xf32>
    tpu.vector_store %arg29[%c0_153, %c0_154, %c0_155], %269 {strides = array<i32>} : memref<1x1x512xf32, #tpu.memory_space<vmem>>, vector<1x1x512xf32>,
    return
  }
  func.func @transform_0(%arg0: i32, %arg1: i32) -> (i32, i32, i32) {
    %c0_i32 = arith.constant 0 : i32
    %c0_i32_0 = arith.constant 0 : i32
    %c0_i32_1 = arith.constant 0 : i32
    return %arg0, %c0_i32, %c0_i32_0 : i32, i32, i32
  }
  func.func @transform_1(%arg0: i32, %arg1: i32) -> (i32, i32, i32) {
    %c0_i32 = arith.constant 0 : i32
    %c0_i32_0 = arith.constant 0 : i32
    return %arg0, %arg1, %c0_i32 : i32, i32, i32
  }
  func.func @transform_2(%arg0: i32, %arg1: i32) -> (i32, i32, i32) {
    %c0_i32 = arith.constant 0 : i32
    %c0_i32_0 = arith.constant 0 : i32
    return %arg0, %arg1, %c0_i32 : i32, i32, i32
  }
  func.func @transform_3(%arg0: i32, %arg1: i32) -> (i32, i32) {
    %c0_i32 = arith.constant 0 : i32
    %c0_i32_0 = arith.constant 0 : i32
    %c0_i32_1 = arith.constant 0 : i32
    return %c0_i32, %c0_i32_0 : i32, i32
  }
  func.func @transform_4(%arg0: i32, %arg1: i32) -> (i32, i32) {
    %c0_i32 = arith.constant 0 : i32
    %c0_i32_0 = arith.constant 0 : i32
    %c0_i32_1 = arith.constant 0 : i32
    return %c0_i32, %c0_i32_0 : i32, i32
  }
  func.func @transform_5(%arg0: i32, %arg1: i32) -> (i32, i32) {
    %c0_i32 = arith.constant 0 : i32
    %c0_i32_0 = arith.constant 0 : i32
    %c0_i32_1 = arith.constant 0 : i32
    return %c0_i32, %c0_i32_0 : i32, i32
  }
  func.func @transform_6(%arg0: i32, %arg1: i32) -> (i32, i32) {
    %c0_i32 = arith.constant 0 : i32
    %c0_i32_0 = arith.constant 0 : i32
    %c0_i32_1 = arith.constant 0 : i32
    return %c0_i32, %c0_i32_0 : i32, i32
  }
  func.func @transform_7(%arg0: i32, %arg1: i32) -> (i32, i32) {
    %c0_i32 = arith.constant 0 : i32
    %c0_i32_0 = arith.constant 0 : i32
    %c0_i32_1 = arith.constant 0 : i32
    return %c0_i32, %c0_i32_0 : i32, i32
  }
  func.func @transform_8(%arg0: i32, %arg1: i32) -> (i32, i32) {
    %c0_i32 = arith.constant 0 : i32
    %c0_i32_0 = arith.constant 0 : i32
    %c0_i32_1 = arith.constant 0 : i32
    return %c0_i32, %c0_i32_0 : i32, i32
  }
  func.func @transform_9(%arg0: i32, %arg1: i32) -> (i32, i32) {
    %c0_i32 = arith.constant 0 : i32
    %c0_i32_0 = arith.constant 0 : i32
    %c0_i32_1 = arith.constant 0 : i32
    return %c0_i32, %c0_i32_0 : i32, i32
  }
  func.func @transform_10(%arg0: i32, %arg1: i32) -> (i32, i32) {
    %c0_i32 = arith.constant 0 : i32
    %c0_i32_0 = arith.constant 0 : i32
    %c0_i32_1 = arith.constant 0 : i32
    return %c0_i32, %c0_i32_0 : i32, i32
  }
  func.func @transform_11(%arg0: i32, %arg1: i32) -> (i32, i32, i32) {
    %c0_i32 = arith.constant 0 : i32
    %c0_i32_0 = arith.constant 0 : i32
    %c0_i32_1 = arith.constant 0 : i32
    %c0_i32_2 = arith.constant 0 : i32
    return %c0_i32, %c0_i32_0, %c0_i32_1 : i32, i32, i32
  }
  func.func @transform_12(%arg0: i32, %arg1: i32) -> (i32, i32) {
    %c0_i32 = arith.constant 0 : i32
    %c0_i32_0 = arith.constant 0 : i32
    %c0_i32_1 = arith.constant 0 : i32
    return %c0_i32, %c0_i32_0 : i32, i32
  }
  func.func @transform_13(%arg0: i32, %arg1: i32) -> (i32, i32) {
    %c0_i32 = arith.constant 0 : i32
    %c0_i32_0 = arith.constant 0 : i32
    %c0_i32_1 = arith.constant 0 : i32
    return %c0_i32, %c0_i32_0 : i32, i32
  }
  func.func @transform_14(%arg0: i32, %arg1: i32) -> (i32, i32, i32) {
    %c0_i32 = arith.constant 0 : i32
    %c0_i32_0 = arith.constant 0 : i32
    %c0_i32_1 = arith.constant 0 : i32
    %c0_i32_2 = arith.constant 0 : i32
    return %c0_i32, %c0_i32_0, %c0_i32_1 : i32, i32, i32
  }
  func.func @transform_15(%arg0: i32, %arg1: i32) -> (i32, i32, i32) {
    %c0_i32 = arith.constant 0 : i32
    %c0_i32_0 = arith.constant 0 : i32
    %c0_i32_1 = arith.constant 0 : i32
    %c0_i32_2 = arith.constant 0 : i32
    return %c0_i32, %c0_i32_0, %c0_i32_1 : i32, i32, i32
  }
  func.func @transform_16(%arg0: i32, %arg1: i32) -> (i32, i32) {
    %c0_i32 = arith.constant 0 : i32
    %c0_i32_0 = arith.constant 0 : i32
    %c0_i32_1 = arith.constant 0 : i32
    return %c0_i32, %c0_i32_0 : i32, i32
  }
  func.func @transform_17(%arg0: i32, %arg1: i32) -> (i32, i32) {
    %c0_i32 = arith.constant 0 : i32
    %c0_i32_0 = arith.constant 0 : i32
    %c0_i32_1 = arith.constant 0 : i32
    return %c0_i32, %c0_i32_0 : i32, i32
  }
  func.func @transform_18(%arg0: i32, %arg1: i32) -> (i32, i32) {
    %c0_i32 = arith.constant 0 : i32
    %c0_i32_0 = arith.constant 0 : i32
    %c0_i32_1 = arith.constant 0 : i32
    return %c0_i32, %c0_i32_0 : i32, i32
  }
  func.func @transform_19(%arg0: i32, %arg1: i32) -> (i32, i32) {
    %c0_i32 = arith.constant 0 : i32
    %c0_i32_0 = arith.constant 0 : i32
    %c0_i32_1 = arith.constant 0 : i32
    return %c0_i32, %c0_i32_0 : i32, i32
  }
  func.func @transform_20(%arg0: i32, %arg1: i32) -> (i32, i32) {
    %c0_i32 = arith.constant 0 : i32
    %c0_i32_0 = arith.constant 0 : i32
    %c0_i32_1 = arith.constant 0 : i32
    return %c0_i32, %c0_i32_0 : i32, i32
  }
  func.func @transform_21(%arg0: i32, %arg1: i32) -> (i32, i32) {
    %c0_i32 = arith.constant 0 : i32
    %c0_i32_0 = arith.constant 0 : i32
    %c0_i32_1 = arith.constant 0 : i32
    return %c0_i32, %c0_i32_0 : i32, i32
  }
  func.func @transform_22(%arg0: i32, %arg1: i32) -> (i32, i32) {
    %c0_i32 = arith.constant 0 : i32
    %c0_i32_0 = arith.constant 0 : i32
    %c0_i32_1 = arith.constant 0 : i32
    return %c0_i32, %c0_i32_0 : i32, i32
  }
  func.func @transform_23(%arg0: i32, %arg1: i32) -> (i32, i32) {
    %c0_i32 = arith.constant 0 : i32
    %c0_i32_0 = arith.constant 0 : i32
    %c0_i32_1 = arith.constant 0 : i32
    return %c0_i32, %c0_i32_0 : i32, i32
  }
  func.func @transform_24(%arg0: i32, %arg1: i32) -> (i32, i32) {
    %c0_i32 = arith.constant 0 : i32
    %c0_i32_0 = arith.constant 0 : i32
    %c0_i32_1 = arith.constant 0 : i32
    return %c0_i32, %c0_i32_0 : i32, i32
  }
  func.func @transform_25(%arg0: i32, %arg1: i32) -> (i32, i32, i32) {
    %c0_i32 = arith.constant 0 : i32
    %c0_i32_0 = arith.constant 0 : i32
    return %arg0, %arg1, %c0_i32 : i32, i32, i32
  }
  func.func @transform_26(%arg0: i32, %arg1: i32) -> (i32, i32, i32) {
    %c1_i32 = arith.constant 1 : i32
    %0 = arith.muli %arg0, %c1_i32 : i32
    %1 = arith.addi %0, %arg1 : i32
    %c0_i32 = arith.constant 0 : i32
    %c0_i32_0 = arith.constant 0 : i32
    %c0_i32_1 = arith.constant 0 : i32
    return %1, %c0_i32, %c0_i32_0 : i32, i32, i32
  }
  func.func @transform_27(%arg0: i32, %arg1: i32) -> (i32, i32, i32) {
    %c1_i32 = arith.constant 1 : i32
    %0 = arith.muli %arg0, %c1_i32 : i32
    %1 = arith.addi %0, %arg1 : i32
    %c0_i32 = arith.constant 0 : i32
    %c0_i32_0 = arith.constant 0 : i32
    %c0_i32_1 = arith.constant 0 : i32
    return %1, %c0_i32, %c0_i32_0 : i32, i32, i32
  }
}

</mosaic_0001>

<bundles_post_ra>
// kernel: bilateral_block_l2_forward.1
= control target key start
LH: loop header
LB: loop body
LE: loop exit
PB: predicated region body
PF: predicated region fallthrough
CT: control target
= control target key end

     0   :  { %s6166_s0 = inlined_call_operand.vmem [shape: f32[2,16,40], index: 0, kind: input, shape index: {}, may-alias: {0,1}]   ;;  %s6167_s1 = inlined_call_operand.vmem [shape: f32[2,16,40], index: 1, kind: input, shape index: {}, may-alias: {0,1}]   ;;  %s6168_s2 = inlined_call_operand.vmem [shape: s32[2,16,4], index: 2, kind: input, shape index: {}]   ;;  %s6169_s3 = inlined_call_operand.vmem [shape: f32[40,32], index: 3, kind: input, shape index: {}]   ;;  %s6170_s4 = inlined_call_operand.vmem [shape: f32[40,32], index: 4, kind: input, shape index: {}]   ;;  %s6171_s5 = inlined_call_operand.vmem [shape: f32[1,32], index: 5, kind: input, shape index: {}]   ;;  %s6172_s6 = inlined_call_operand.vmem [shape: f32[16,64], index: 6, kind: input, shape index: {}]   ;;  %s6173_s7 = inlined_call_operand.vmem [shape: f32[1,64], index: 7, kind: input, shape index: {}]   ;;  %s6174_s8 = inlined_call_operand.vmem [shape: f32[64,64], index: 8, kind: input, shape index: {}]   ;;  %s6175_s9 = inlined_call_operand.vmem [shape: f32[1,64], index: 9, kind: input, shape index: {}]   ;;  %s6176_s10 = inlined_call_operand.vmem [shape: f32[32,128], index: 10, kind: input, shape index: {}]   ;;  %s6177_s11 = inlined_call_operand.vmem [shape: f32[3,32,128], index: 11, kind: input, shape index: {}]   ;;  %s6178_s12 = inlined_call_operand.vmem [shape: f32[1,128], index: 12, kind: input, shape index: {}]   ;;  %s6179_s13 = inlined_call_operand.vmem [shape: f32[32,128], index: 13, kind: input, shape index: {}]   ;;  %s6180_s14 = inlined_call_operand.vmem [shape: f32[4,32,128], index: 14, kind: input, shape index: {}]   ;;  %s6181_s15 = inlined_call_operand.vmem [shape: f32[4,64,128], index: 15, kind: input, shape index: {}]   ;;  %s6182_s16 = inlined_call_operand.vmem [shape: f32[1,128], index: 16, kind: input, shape index: {}]   ;;  %s6183_s17 = inlined_call_operand.vmem [shape: f32[1,128], index: 17, kind: input, shape index: {}]   ;;  %s6184_s18 = inlined_call_operand.vmem [shape: f32[1,128], index: 18, kind: input, shape index: {}]   ;;  %s6185_s19 = inlined_call_operand.vmem [shape: f32[32,32], index: 19, kind: input, shape index: {}]   ;;  %s6186_s20 = inlined_call_operand.vmem [shape: f32[1,32], index: 20, kind: input, shape index: {}]   ;;  %s6187_s21 = inlined_call_operand.vmem [shape: f32[32,64], index: 21, kind: input, shape index: {}]   ;;  %s6188_s22 = inlined_call_operand.vmem [shape: f32[1,64], index: 22, kind: input, shape index: {}]   ;;  %s6189_s23 = inlined_call_operand.vmem [shape: f32[64,512], index: 23, kind: input, shape index: {}]   ;;  %s6190_s24 = inlined_call_operand.vmem [shape: f32[1,512], index: 24, kind: input, shape index: {}]   ;;  %s6191_s25 = inlined_call_operand.vmem [shape: f32[2,16,128], index: 25, kind: output, shape index: {0}]   ;;  %s6192_s26 = inlined_call_operand.vmem [shape: f32[2,1,64], index: 26, kind: output, shape index: {1}]   ;;  %s6193_s27 = inlined_call_operand.vmem [shape: f32[2,1,512], index: 27, kind: output, shape index: {2}]  }
   0x1   :  { %6204 = sst [smem:[#allocation2_spill]] %s6166_s0 }
   0x2   :  { %6205 = sst [smem:[#allocation3_spill]] %s6167_s1 }
   0x3   :  { %6206 = sst [smem:[#allocation4_spill]] %s6168_s2 }
   0x4   :  { %6207 = sst [smem:[#allocation5_spill]] %s6169_s3 }
   0x5   :  { %6208 = sst [smem:[#allocation6_spill]] %s6170_s4  ;;  %s5499_s4 = smov 0  }
   0x6   :  { %6209 = sst [smem:[#allocation7_spill]] %s6171_s5 }
   0x7   :  { %6210 = sst [smem:[#allocation8_spill]] %s6172_s6 }
   0x8   :  { %6211 = sst [smem:[#allocation9_spill]] %s6173_s7  ;;  %s5497_s7 = smov 0  }
   0x9   :  { %6212 = sst [smem:[#allocation10_spill]] %s6174_s8  ;;  %s5501_s8 = smov 0  }
   0xa   :  { %6213 = sst [smem:[#allocation11_spill]] %s6175_s9 }
   0xb   :  { %6214 = sst [smem:[#allocation12_spill]] %s6176_s10 }
   0xc   :  { %6215 = sst [smem:[#allocation13_spill]] %s6177_s11 }
   0xd   :  { %6216 = sst [smem:[#allocation14_spill]] %s6179_s13 }
   0xe   :  { %6217 = sst [smem:[#allocation15_spill]] %s6180_s14 }
   0xf LB: > { %s50_s30 = sadd.s32 1, %s5341_s4  ;;  %p4242_p0 = scmp.ge.s32.totalorder %s5345_s8, 1  ;;  %s5345_s8 = sphi %s5501_s8, %s38_s8   ;;  %s5341_s4 = sphi %s5499_s4, %s6233_s4   ;;  %s5337_s7 = sphi %s5497_s7, %s6232_s7  }
  0x10   : > { %p52_p1 = scmp.ge.s32.totalorder %s50_s30, 2  ;;  %p794_p2 = scmp.lt.s32.totalorder %s5345_s8, 3 }
  0x12   : > { %s6235_s30 = smov (%p52_p1, %s50_s30), 0  ;;  %p795_p3 = pnand %p4242_p0, %p794_p2 }
  0x13   : > { %p897_p4 = scmp.lt.s32.totalorder (!%p795_p3), %s5337_s7, 1  ;;  %v5347_v0 = vmov (!%p795_p3), 1   ;;  %v5348_v1 = vmov (!%p795_p3), 0   ;;  %s6218_s0 = sld [smem:[#allocation4_spill]] (!%p795_p3)  ;;  %vm2217_vm0 = vcmask (!%p795_p3), 261120   ;;  %v5349_v10 = vmov (!%p795_p3), 2  }
  0x14   : > { %798 = sbr.rel (%p795_p3) target bundleno = 1717 (0x6b5), region = 120  ;;  %5298 = vset.pattern.permute.xlu1 (!%p795_p3), %v5347_v0  ;;  %5297 = vset.pattern.permute.xlu0 (!%p795_p3), %v5348_v1  ;;  %s6219_s6 = sld [smem:[#allocation2_spill]] (!%p795_p3)  ;;  %v5350_v11 = vmov (!%p795_p3), 3   ;;  %v949_v12 = vlaneseq (!%p795_p3)  ;;  %vm963_vm1 = vcmask (!%p795_p3), 130048   ;;  %v5351_v17 = vmov (!%p795_p3), 0.0  }
  0x15   : > { %s6220_s5 = sld [smem:[#allocation5_spill]] (!%p795_p3)  ;;  %s6221_s1 = sld [smem:[#allocation6_spill]] (!%p795_p3)  ;;  %vm1344_vm8 = vcmask (!%p795_p3), 326656  }
  0x16   : > { %v950_v13 = vand.u32 (!%p795_p3), 127, %v949_v12  ;;  %s6222_s28 = sld [smem:[#allocation3_spill]] (!%p795_p3)  ;;  %s6223_s14 = sld [smem:[#allocation15_spill]] (!%p795_p3) }
  0x17   : > { %s6225_s2 = sld [smem:[#allocation7_spill]] (!%p795_p3)  ;;  %s6226_s29 = sld [smem:[#allocation10_spill]] (!%p795_p3) }
  0x18   : > { %s6227_s13 = sld [smem:[#allocation14_spill]] (!%p795_p3) }
  0x1b   : > { %s6237_s7 = smov (!%p897_p4, %s5337_s7), 1  ;;  %v1332_v16 = vld [vmem:[%s6220_s5] sm:$0xff]  ;;  %v1333_v20 = vld [vmem:[%s6220_s5 + $0x8] sm:$0xff]  ;;  %v1334_v29 = vld [vmem:[%s6220_s5 + $0x10] sm:$0xff] }
  0x1c   : > { %s5518_s9 = sshll.u32 %s6237_s7, 4  ;;  %v1426_v21 = vld [vmem:[%s6221_s1] sm:$0xff]  ;;  %v1427_v22 = vld [vmem:[%s6221_s1 + $0x8] sm:$0xff]  ;;  %v4969_v25 = vpack.c.bf16 %v1333_v20, %v1332_v16  ;;  %v1335_v30 = vld [vmem:[%s6220_s5 + $0x18] sm:$0xff] }
  0x1d   : > { %s920_s10 = scalar_lea.vmem %s6218_s0, %s5518_s9  ;;  %s901_s11 = scalar_lea.vmem %s6219_s6, %s5518_s9  ;;  %v5549_v26 = vpack.c.bf16 %v1427_v22, %v1426_v21  ;;  %v4973_v35 = vpack.c.bf16 %v1335_v30, %v1334_v29  ;;  %v1428_v37 = vld [vmem:[%s6221_s1 + $0x10] sm:$0xff]  ;;  %v1429_v38 = vld [vmem:[%s6221_s1 + $0x18] sm:$0xff]  ;;  %v1336_v43 = vld [vmem:[%s6220_s5 + $0x20] sm:$0xff] }
  0x1e   : > { %v947_v2 = vld [vmem:[%s920_s10] sm:$0xff]  ;;  %v944_v4 = vld [vmem:[%s901_s11 + $0x8] sm:$0xff]  ;;  %s5559_s0 = scalar_lea.vmem %s6222_s28, %s5518_s9  ;;  %v4981_v44 = vpack.c.bf16 %v1429_v38, %v1428_v37  ;;  %v2299_v61 = vld [vmem:[%s6223_s14 + $0x10] sm:$0xff]  ;;  %s6224_s28 = sld [smem:[#allocation8_spill]] }
  0x1f   : > { %1048 = vperm.xlu1 %5298, %v947_v2   ;;  %v943_v3 = vld [vmem:[%s901_s11] sm:$0xff]  ;;  %952 = vperm.xlu0 %5297, %v947_v2   ;;  %v3642_v7 = vsel %vm2217_vm0, %v944_v4, -inf  ;;  %v948_v8 = vld [vmem:[%s920_s10 + $0x8] sm:$0xff]  ;;  %v2300_v62 = vld [vmem:[%s6223_s14 + $0x18] sm:$0xff]  ;;  %s6230_s5 = sld [smem:[#allocation13_spill]]  ;;  %s5355_s6 = smov 64  }
  0x20   : > { %v4953_v5 = vpack.c.bf16 %v944_v4, %v943_v3  ;;  %v3641_v6 = vsel %vm2217_vm0, %v943_v3, -inf  ;;  %v5571_v36 = vld [vmem:[%s5559_s0] sm:$0xff]  ;;  %v5592_v45 = vld [vmem:[%s5559_s0 + $0x8] sm:$0xff]  ;;  %v5041_v4 = vpack.c.bf16 %v2300_v62, %v2299_v61  ;;  %v4311_v20 = vld [vmem:[%s6223_s14 + $0x58] sm:$0xff]  ;;  %s5352_s0 = smov 112  }
  0x21   : > { %v5530_v9 = vmax.f32 %v3641_v6, %v3642_v7  ;;  %v1430_v46 = vld [vmem:[%s6221_s1 + $0x20] sm:$0xff]  ;;  %v2298_v59 = vld [vmem:[%s6223_s14 + $0x8] sm:$0xff]  ;;  %s6228_s1 = sld [smem:[#allocation9_spill]] }
  0x22   : > { %4954 = vmatprep.subr.bf16.mxu0 %v4953_v5  ;;  %4958 = vmatprep.subr.bf16.mxu1 %v4953_v5  ;;  %v2297_v58 = vld [vmem:[%s6223_s14] sm:$0xff]  ;;  %v4303_v6 = vld [vmem:[%s6223_s14 + $0x28] sm:$0xff] }
  0x23   : > { %1051 = vperm.xlu1 %5298, %v948_v8   ;;  %955 = vperm.xlu0 %5297, %v948_v8   ;;  %v5037_v1 = vpack.c.bf16 %v2298_v59, %v2297_v58  ;;  %v4309_v16 = vld [vmem:[%s6223_s14 + $0x48] sm:$0xff]  ;;  %v4314_v22 = vld [vmem:[%s6223_s14 + $0x60] sm:$0xff] }
  0x24   : > { %4956 = vmatpush3.bf16.msra.mxu0 %v4953_v5  ;;  %4960 = vmatpush3.bf16.msra.mxu1 %v4953_v5  ;;  %v1828_v29 = vld [vmem:[%s6224_s28 + $0x8] sm:$0xff] }
  0x25   : > { %4962 = vmatprep.subr.bf16.mxu0 %v4953_v5  ;;  %4966 = vmatprep.subr.bf16.mxu1 %v4953_v5 }
  0x27   : > { %5300 = vset.pattern.permute.xlu1 %v5349_v10  ;;  %5299 = vset.pattern.permute.xlu0 %v5349_v10 }
  0x28   : > { %1146 = vperm.xlu1 %5300, %v948_v8   ;;  %1143 = vperm.xlu0 %5299, %v947_v2  }
  0x2c   : > { %5301 = vset.pattern.permute.xlu1 %v5350_v11  ;;  %5302 = vset.pattern.permute.xlu0 %v5350_v11  ;;  %v4304_v11 = vld [vmem:[%s6223_s14 + $0x30] sm:$0xff] }
  0x2d   : > { %1238 = vperm.xlu1 %5301, %v947_v2   ;;  %1241 = vperm.xlu0 %5302, %v948_v8  }
  0x9e   : > { %v1049_v14 = vpop.permute.xlu1 %1048  ;;  %v953_v15 = vpop.permute.xlu0 %952 }
  0x9f   : > { %vm1053_vm2 = vcmp.eq.s32.totalorder %v950_v13, %v1049_v14  ;;  %vm957_vm3 = vcmp.eq.s32.totalorder %v950_v13, %v953_v15  ;;  %v4308_v15 = vld [vmem:[%s6223_s14 + $0x40] sm:$0xff] }
  0xa0   : > { %v4252_v18 = vsel %vm957_vm3, 1.0, %v5351_v17  ;;  %v4256_v19 = vsel %vm1053_vm2, 1.0, %v5351_v17 }
  0xa1   : > { %4590 = vmatprep.mubr.msk.f32.mxu0 %vm963_vm1, %v4252_v18  ;;  %4597 = vmatprep.mubr.msk.f32.mxu1 %vm963_vm1, %v4256_v19  ;;  %v5053_v18 = vpack.c.bf16 %v4309_v16, %v4308_v15  ;;  %v4310_v19 = vld [vmem:[%s6223_s14 + $0x50] sm:$0xff] }
  0xa2   : > { %v1052_v23 = vpop.permute.xlu1 %1051  ;;  %v956_v24 = vpop.permute.xlu0 %955  ;;  %v5057_v21 = vpack.c.bf16 %v4311_v20, %v4310_v19  ;;  %v1991_v20 = vld [vmem:[%s6226_s29 + $0x10] sm:$0xff] }
  0xa3   : > { %vm1054_vm4 = vcmp.eq.s32.totalorder %v950_v13, %v1052_v23  ;;  %vm958_vm5 = vcmp.eq.s32.totalorder %v950_v13, %v956_v24  ;;  %v4315_v23 = vld [vmem:[%s6223_s14 + $0x68] sm:$0xff] }
  0xa4   : > { %v4257_v27 = vsel %vm1054_vm4, 1.0, %v5351_v17  ;;  %v4253_v28 = vsel %vm958_vm5, 1.0, %v5351_v17  ;;  %v5061_v24 = vpack.c.bf16 %v4315_v23, %v4314_v22 }
  0xa5   : > { %4591 = vmatmul.mubr.msk.f32.vlgmr.msra.gmra.mrb[0].mxu0 %vm963_vm1, %v4253_v28  ;;  %4598 = vmatmul.mubr.msk.f32.vlgmr.msra.gmra.mrb[0].mxu1 %vm963_vm1, %v4257_v27  ;;  %v1827_v28 = vld [vmem:[%s6224_s28] sm:$0xff] }
  0xa6   : > { %4964 = vmatpush3.bf16.msra.mxu0 %v4953_v5  ;;  %4968 = vmatpush3.bf16.msra.mxu1 %v4953_v5  ;;  %v4302_v5 = vld [vmem:[%s6223_s14 + $0x20] sm:$0xff]  ;;  %v5009_v30 = vpack.c.bf16 %v1828_v29, %v1827_v28  ;;  %v1994_v28 = vld [vmem:[%s6226_s29 + $0x28] sm:$0xff] }
  0xa7   : > { %v1147_v31 = vpop.permute.xlu1 %1146  ;;  %v1144_v32 = vpop.permute.xlu0 %1143  ;;  %4970 = vmatprep.subr.bf16.mxu0 %v4969_v25  ;;  %4978 = vmatprep.subr.bf16.mxu1 %v5549_v26  ;;  %v5045_v10 = vpack.c.bf16 %v4303_v6, %v4302_v5 }
  0xa8   : > { %vm1149_vm6 = vcmp.eq.s32.totalorder %v950_v13, %v1147_v31  ;;  %vm1148_vm7 = vcmp.eq.s32.totalorder %v950_v13, %v1144_v32  ;;  %v4268_v31 = vld [vmem:[%s6225_s2] ss:$0 sm:$0xff] }
  0xa9   : > { %v4261_v33 = vsel %vm1149_vm6, 1.0, %v5351_v17  ;;  %v4260_v34 = vsel %vm1148_vm7, 1.0, %v5351_v17  ;;  %vm2004_vm6 = vcmask 523264  }
  0xaa   : > { %4604 = vmatprep.mubr.msk.f32.mxu0 %vm963_vm1, %v4260_v34 }
  0xab   : > { %4605 = vmatmul.mubr.msk.f32.vlgmr.msra.gmra.mrb[2].mxu0 %vm963_vm1, %v4261_v33 }
  0xac   : > { %v1239_v39 = vpop.permute.xlu1 %1238  ;;  %v1242_v40 = vpop.permute.xlu0 %1241  ;;  %4972 = vmatpush3.bf16.msra.mxu0 %v4969_v25  ;;  %4624 = vmatprep.mubr.msk.f32.mxu0 %vm1344_vm8, %v5571_v36  ;;  %v4316_v25 = vld [vmem:[%s6223_s14 + $0x70] sm:$0xff] }
  0xad   : > { %vm1243_vm9 = vcmp.eq.s32.totalorder %v950_v13, %v1239_v39  ;;  %vm1244_vm10 = vcmp.eq.s32.totalorder %v950_v13, %v1242_v40  ;;  %4974 = vmatprep.subr.bf16.mxu0 %v4973_v35  ;;  %v4305_v13 = vld [vmem:[%s6223_s14 + $0x38] sm:$0xff] }
  0xae   : > { %v4264_v41 = vsel %vm1243_vm9, 1.0, %v5351_v17  ;;  %v4265_v42 = vsel %vm1244_vm10, 1.0, %v5351_v17  ;;  %v5049_v14 = vpack.c.bf16 %v4305_v13, %v4304_v11 }
  0xaf   : > { %4611 = vmatprep.mubr.msk.f32.mxu1 %vm963_vm1, %v4264_v41 }
  0xb0   : > { %4612 = vmatmul.mubr.msk.f32.vlgmr.msra.gmra.mrb[2].mxu1 %vm963_vm1, %v4265_v42  ;;  %4976 = vmatpush3.bf16.msra.mxu0 %v4973_v35 }
  0xb1   : > { %4622 = vmatprep.subr.mxu0 %v1336_v43  ;;  %4980 = vmatpush3.bf16.msra.mxu1 %v5549_v26 }
  0xb2   : > { %4982 = vmatprep.subr.bf16.mxu1 %v4981_v44 }
  0xb4   : > { %4623 = vmatpush3.msra.mxu0 %v1336_v43 }
  0xb5   : > { %4986 = vmatprep.subr.bf16.mxu0 %v5549_v26  ;;  %4625 = vmatmul.mubr.msk.f32.vlgmr.msra.gmra.mrb[4].mxu0 %vm1344_vm8, %v5592_v45 }
  0xb6   : > { %4988 = vmatpush3.bf16.msra.mxu0 %v5549_v26  ;;  %4984 = vmatpush3.bf16.msra.mxu1 %v4981_v44 }
  0xb7   : > { %4990 = vmatprep.subr.bf16.mxu0 %v4981_v44  ;;  %4635 = vmatprep.subr.mxu1 %v1430_v46 }
  0xba   : > { %4992 = vmatpush3.bf16.msra.mxu0 %v4981_v44  ;;  %4636 = vmatpush3.msra.mxu1 %v1430_v46 }
  0xbb   : > { %4648 = vmatprep.subr.mxu0 %v1430_v46  ;;  %4994 = vmatprep.subr.bf16.mxu1 %v5549_v26 }
  0xbe   : > { %4649 = vmatpush3.msra.mxu0 %v1430_v46 }
  0xbf   : > { %5002 = vmatprep.subr.bf16.mxu0 %v5549_v26 }
 0x178   : > { %v4592_v47 = vpop.f32.mrb[0].mxu0  ;;  %v4599_v48 = vpop.f32.mrb[0].mxu1 }
 0x179   : > { %v1036_v49 = vpop.f32.mrb[1].mxu0  ;;  %v1131_v50 = vpop.f32.mrb[1].mxu1  ;;  %v5610_v53 = vsub.f32 %v4592_v47, %v5592_v45  ;;  %v5613_v54 = vsub.f32 %v4599_v48, %v5592_v45 }
 0x17a   : > { %v5604_v51 = vsub.f32 %v1036_v49, %v5571_v36  ;;  %v5607_v52 = vsub.f32 %v1131_v50, %v5571_v36 }
 0x17c   : > { %4637 = vmatprep.mubr.msk.f32.mxu1 %vm1344_vm8, %v5604_v51  ;;  %4650 = vmatprep.mubr.msk.f32.mxu0 %vm1344_vm8, %v5607_v52 }
 0x17d   : > { %4638 = vmatmul.mubr.msk.f32.vlgmr.msra.gmra.mrb[4].mxu1 %vm1344_vm8, %v5610_v53  ;;  %4651 = vmatmul.mubr.msk.f32.vlgmr.msra.gmra.mrb[6].mxu0 %vm1344_vm8, %v5613_v54 }
 0x17e   : > { %4996 = vmatpush3.bf16.msra.mxu1 %v5549_v26  ;;  %5004 = vmatpush3.bf16.msra.mxu0 %v5549_v26  ;;  %v4606_v55 = vpop.f32.mrb[2].mxu0  ;;  %v4317_v26 = vld [vmem:[%s6223_s14 + $0x78] sm:$0xff]  ;;  %s6231_s14 = sld [smem:[#allocation11_spill]] }
 0x17f   : > { %4998 = vmatprep.subr.bf16.mxu1 %v4981_v44  ;;  %v1226_v56 = vpop.f32.mrb[3].mxu0  ;;  %5006 = vmatprep.subr.bf16.mxu0 %v4981_v44  ;;  %v5646_v2 = vsub.f32 %v4606_v55, %v5592_v45  ;;  %v5065_v27 = vpack.c.bf16 %v4317_v26, %v4316_v25 }
 0x180   : > { %v5626_v57 = vsub.f32 %v1226_v56, %v5571_v36 }
 0x182   : > { %5000 = vmatpush3.bf16.msra.mxu1 %v4981_v44  ;;  %5008 = vmatpush3.bf16.msra.mxu0 %v4981_v44 }
 0x183   : > { %v4613_v60 = vpop.f32.mrb[2].mxu1  ;;  %4661 = vmatprep.subr.mxu1 %v1430_v46  ;;  %4663 = vmatprep.mubr.msk.f32.mxu1 %vm1344_vm8, %v5626_v57 }
 0x184   : > { %v5643_v63 = vsub.f32 %v4613_v60, %v5592_v45  ;;  %v1321_v0 = vpop.f32.mrb[3].mxu1  ;;  %4674 = vmatprep.subr.mxu0 %v1430_v46 }
 0x185   : > { %v5649_v3 = vsub.f32 %v1321_v0, %v5571_v36  ;;  %v1989_v0 = vld [vmem:[%s6226_s29] sm:$0xff] }
 0x186   : > { %4662 = vmatpush3.msra.mxu1 %v1430_v46  ;;  %4675 = vmatpush3.msra.mxu0 %v1430_v46 }
 0x187   : > { %4664 = vmatmul.mubr.msk.f32.vlgmr.msra.gmra.mrb[6].mxu1 %vm1344_vm8, %v5646_v2  ;;  %4676 = vmatprep.mubr.msk.f32.mxu0 %vm1344_vm8, %v5649_v3 }
 0x188   : > { %5038 = vmatprep.subr.bf16.mxu0 %v5037_v1  ;;  %4677 = vmatmul.mubr.msk.f32.vlgmr.msra.gmra.mrb[8].mxu0 %vm1344_vm8, %v5643_v63  ;;  %v4626_v7 = vpop.f32.mrb[4].mxu0 }
 0x189   : > { %5040 = vmatpush3.bf16.msra.mxu0 %v5037_v1  ;;  %4742 = vmatprep.mubr.msk.f32.mxu0 %vm2217_vm0, %v5604_v51  ;;  %v1417_v8 = vpop.f32.mrb[5].mxu0  ;;  %v1423_v32 = vadd.f32 %v4626_v7, %v4268_v31  ;;  %v1990_v1 = vld [vmem:[%s6226_s29 + $0x8] sm:$0xff] }
 0x18a   : > { %5042 = vmatprep.subr.bf16.mxu0 %v5041_v4  ;;  %5010 = vmatprep.subr.bf16.mxu1 %v5009_v30  ;;  %v1418_v33 = vadd.f32 %v4268_v31, %v1417_v8  ;;  %v5013_v5 = vpack.c.bf16 %v1990_v1, %v1989_v0 }
 0x18b   : > { %5012 = vmatpush3.bf16.msra.mxu1 %v5009_v30 }
 0x18c   : > { %5014 = vmatprep.subr.bf16.mxu1 %v5013_v5 }
 0x18d   : > { %5044 = vmatpush3.bf16.msra.mxu0 %v5041_v4 }
 0x18e   : > { %5046 = vmatprep.subr.bf16.mxu0 %v5045_v10 }
 0x190   : > { %4743 = vmatmul.mubr.msk.f32.vlgmr.msra.gmra.mrb[10].mxu0 %vm2217_vm0, %v5610_v53 }
 0x191   : > { %5048 = vmatpush3.bf16.msra.mxu0 %v5045_v10  ;;  %4753 = vmatprep.mubr.msk.f32.mxu0 %vm2217_vm0, %v5607_v52 }
 0x192   : > { %5050 = vmatprep.subr.bf16.mxu0 %v5049_v14 }
 0x195   : > { %5052 = vmatpush3.bf16.msra.mxu0 %v5049_v14 }
 0x196   : > { %5054 = vmatprep.subr.bf16.mxu0 %v5053_v18 }
 0x198   : > { %4754 = vmatmul.mubr.msk.f32.vlgmr.msra.gmra.mrb[10].mxu0 %vm2217_vm0, %v5613_v54 }
 0x199   : > { %5056 = vmatpush3.bf16.msra.mxu0 %v5053_v18  ;;  %4764 = vmatprep.mubr.msk.f32.mxu0 %vm2217_vm0, %v5626_v57 }
 0x19a   : > { %5058 = vmatprep.subr.bf16.mxu0 %v5057_v21 }
 0x19d   : > { %5060 = vmatpush3.bf16.msra.mxu0 %v5057_v21  ;;  %v1992_v21 = vld [vmem:[%s6226_s29 + $0x18] sm:$0xff] }
 0x19e   : > { %5062 = vmatprep.subr.bf16.mxu0 %v5061_v24  ;;  %v5017_v25 = vpack.c.bf16 %v1992_v21, %v1991_v20 }
 0x1a0   : > { %4765 = vmatmul.mubr.msk.f32.vlgmr.msra.gmra.mrb[10].mxu0 %vm2217_vm0, %v5646_v2 }
 0x1a1   : > { %5064 = vmatpush3.bf16.msra.mxu0 %v5061_v24  ;;  %4775 = vmatprep.mubr.msk.f32.mxu0 %vm2217_vm0, %v5649_v3 }
 0x1a2   : > { %5066 = vmatprep.subr.bf16.mxu0 %v5065_v27 }
 0x1a5   : > { %5068 = vmatpush3.bf16.msra.mxu0 %v5065_v27  ;;  %v1993_v27 = vld [vmem:[%s6226_s29 + $0x20] sm:$0xff] }
 0x1a6   : > { %v5021_v31 = vpack.c.bf16 %v1994_v28, %v1993_v27 }
 0x1a8   : > { %4776 = vmatmul.mubr.msk.f32.vlgmr.msra.gmra.mrb[10].mxu0 %vm2217_vm0, %v5643_v63 }
 0x250   : > { %v4639_v34 = vpop.f32.mrb[4].mxu1  ;;  %v4652_v35 = vpop.f32.mrb[6].mxu0 }
 0x251   : > { %v1513_v37 = vadd.f32 %v4639_v34, %v1423_v32  ;;  %v1612_v38 = vadd.f32 %v4652_v35, %v1423_v32  ;;  %v1503_v39 = vpop.f32.mrb[5].mxu1  ;;  %v1602_v40 = vpop.f32.mrb[7].mxu0 }
 0x252   : > { %v1512_v41 = vadd.f32 %v1503_v39, %v1418_v33  ;;  %v1611_v42 = vadd.f32 %v1602_v40, %v1418_v33 }
 0x253   : > { %v1517_v46 = vmul.f32 0.01, %v1513_v37  ;;  %vm1515_vm13 = vcmp.gt.f32.partialorder %v1513_v37, 0.0  ;;  %v1616_v49 = vmul.f32 0.01, %v1612_v38  ;;  %vm1614_vm14 = vcmp.gt.f32.partialorder %v1612_v38, 0.0 }
 0x254   : > { %v1516_v43 = vmul.f32 0.01, %v1512_v41  ;;  %v1615_v44 = vmul.f32 0.01, %v1611_v42  ;;  %vm1613_vm11 = vcmp.gt.f32.partialorder %v1611_v42, 0.0  ;;  %vm1514_vm12 = vcmp.gt.f32.partialorder %v1512_v41, 0.0 }
 0x255   : > { %v1519_v55 = vsel %vm1515_vm13, %v1513_v37, %v1517_v46  ;;  %v1618_v8 = vsel %vm1614_vm14, %v1612_v38, %v1616_v49  ;;  %v2207_v46 = vld [vmem:[%s6227_s13 + $0x8] sm:$0xff]  ;;  %vm5354_vm13 = vmmov 0  }
 0x256   : > { %v1617_v47 = vsel %vm1613_vm11, %v1611_v42, %v1615_v44  ;;  %v1518_v48 = vsel %vm1514_vm12, %v1512_v41, %v1516_v43  ;;  %v1995_v41 = vld [vmem:[%s6226_s29 + $0x30] sm:$0xff]  ;;  %v1996_v42 = vld [vmem:[%s6226_s29 + $0x38] sm:$0xff]  ;;  %v2206_v44 = vld [vmem:[%s6227_s13] sm:$0xff] }
 0x257   : > { %1621 = vrot.lane.b32.xlu0 %v1617_v47, %s5352_s0  ;;  %1522 = vrot.lane.b32.xlu1 %v1518_v48, %s5352_s0  ;;  %v5025_v43 = vpack.c.bf16 %v1996_v42, %v1995_v41  ;;  %v2728_v41 = vld [vmem:[%s6230_s5 + $0x10] sm:$0xff]  ;;  %v2729_v42 = vld [vmem:[%s6230_s5 + $0x18] sm:$0xff] }
 0x25a   : > { %v4665_v50 = vpop.f32.mrb[6].mxu1 }
 0x25b   : > { %v1711_v56 = vadd.f32 %v4665_v50, %v1423_v32  ;;  %v1701_v58 = vpop.f32.mrb[7].mxu1  ;;  %v4678_v59 = vpop.f32.mrb[8].mxu0  ;;  %1524 = vrot.lane.b32.xlu1 %v1519_v55, %s5352_s0 }
 0x25c   : > { %v1710_v60 = vadd.f32 %v1701_v58, %v1418_v33  ;;  %v1810_v61 = vadd.f32 %v4678_v59, %v1423_v32  ;;  %v1800_v62 = vpop.f32.mrb[9].mxu0  ;;  %v2208_v59 = vld [vmem:[%s6227_s13 + $0x10] sm:$0xff] }
 0x25d   : > { %v1809_v4 = vadd.f32 %v1800_v62, %v1418_v33  ;;  %v1715_v6 = vmul.f32 0.01, %v1711_v56  ;;  %vm1713_vm2 = vcmp.gt.f32.partialorder %v1711_v56, 0.0 }
 0x25e   : > { %v1714_v7 = vmul.f32 0.01, %v1710_v60  ;;  %vm1712_vm15 = vcmp.gt.f32.partialorder %v1710_v60, 0.0  ;;  %v1814_v13 = vmul.f32 0.01, %v1810_v61  ;;  %vm1812_vm4 = vcmp.gt.f32.partialorder %v1810_v61, 0.0 }
 0x25f   : > { %1623 = vrot.lane.b32.xlu1 %v1618_v8, %s5352_s0  ;;  %v1813_v10 = vmul.f32 0.01, %v1809_v4  ;;  %vm1811_vm3 = vcmp.gt.f32.partialorder %v1809_v4, 0.0  ;;  %v1717_v14 = vsel %vm1713_vm2, %v1711_v56, %v1715_v6 }
 0x260   : > { %v1716_v11 = vsel %vm1712_vm15, %v1710_v60, %v1714_v7  ;;  %v1816_v16 = vsel %vm1812_vm4, %v1810_v61, %v1814_v13  ;;  %v2209_v60 = vld [vmem:[%s6227_s13 + $0x18] sm:$0xff] }
 0x261   : > { %1720 = vrot.lane.b32.xlu0 %v1716_v11, %s5352_s0  ;;  %v1815_v15 = vsel %vm1811_vm3, %v1809_v4, %v1813_v10  ;;  %v5033_v6 = vpack.c.bf16 %v2209_v60, %v2208_v59 }
 0x263   : > { %1722 = vrot.lane.b32.xlu1 %v1717_v14, %s5352_s0 }
 0x265   : > { %1819 = vrot.lane.b32.xlu0 %v1815_v15, %s5352_s0 }
 0x267   : > { %1821 = vrot.lane.b32.xlu1 %v1816_v16, %s5352_s0  ;;  %s6229_s0 = sld [smem:[#allocation12_spill]] }
 0x26d   : > { %v2640_v10 = vld [vmem:[%s6229_s0] sm:$0xff] }
 0x2c9   : > { %v1523_v18 = vpop.permute.xlu1 %1522  ;;  %v1622_v22 = vpop.permute.xlu0 %1621 }
 0x2ca   : > { %v1528_v19 = vmul.f32 %v1523_v18, %v1518_v48  ;;  %v1627_v26 = vmul.f32 %v1622_v22, %v1617_v47  ;;  %v5029_v47 = vpack.c.bf16 %v2207_v46, %v2206_v44  ;;  %v4279_v48 = vld [vmem:[%s6228_s1] ss:$0 sm:$0xff]  ;;  %s935_s1 = scalar_lea.vmem %s6192_s26, %s6237_s7 }
 0x2cb   : > { %v4325_v44 = vld [vmem:[%s6230_s5 + $0x20] sm:$0xff] }
 0x2cc   : > { %4683 = vmatprep.mubr.msk.f32.mxu1 %vm963_vm1, %v1528_v19 }
 0x2cd   : > { %v1525_v23 = vpop.permute.xlu1 %1524 }
 0x2ce   : > { %v1529_v24 = vmul.f32 %v1525_v23, %v1519_v55 }
 0x2d0   : > { %4684 = vmatmul.mubr.msk.f32.vlgmr.msra.gmra.mrb[8].mxu1 %vm963_vm1, %v1529_v24 }
 0x2d1   : > { %4686 = vmatprep.mubr.msk.f32.mxu1 %vm963_vm1, %v1627_v26  ;;  %v1624_v29 = vpop.permute.xlu1 %1623  ;;  %5016 = vmatpush3.bf16.msra.mxu1 %v5013_v5 }
 0x2d2   : > { %v1628_v30 = vmul.f32 %v1624_v29, %v1618_v8  ;;  %5018 = vmatprep.subr.bf16.mxu1 %v5017_v25 }
 0x2d3   : > { %v1721_v32 = vpop.permute.xlu0 %1720 }
 0x2d4   : > { %v1726_v33 = vmul.f32 %v1721_v32, %v1716_v11  ;;  %4687 = vmatmul.mubr.msk.f32.gmra.mrb[10].mxu1 %vm963_vm1, %v1628_v30  ;;  %v2641_v11 = vld [vmem:[%s6229_s0 + $0x8] sm:$0xff] }
 0x2d5   : > { %v1723_v34 = vpop.permute.xlu1 %1722  ;;  %5020 = vmatpush3.bf16.msra.mxu1 %v5017_v25  ;;  %v5069_v20 = vpack.c.bf16 %v2641_v11, %v2640_v10  ;;  %v2993_v10 = vld [vmem:[%s6181_s15 + $0x20] sm:$0xff]  ;;  %v2994_v11 = vld [vmem:[%s6181_s15 + $0x28] sm:$0xff] }
 0x2d6   : > { %4689 = vmatprep.mubr.msk.f32.mxu1 %vm963_vm1, %v1726_v33  ;;  %v1727_v35 = vmul.f32 %v1723_v34, %v1717_v14  ;;  %5022 = vmatprep.subr.bf16.mxu1 %v5021_v31  ;;  %v2642_v34 = vld [vmem:[%s6229_s0 + $0x10] sm:$0xff] }
 0x2d7   : > { %v1820_v37 = vpop.permute.xlu0 %1819 }
 0x2d8   : > { %v1825_v38 = vmul.f32 %v1820_v37, %v1815_v15  ;;  %4690 = vmatmul.mubr.msk.f32.gmra.mrb[12].mxu1 %vm963_vm1, %v1727_v35  ;;  %v2643_v35 = vld [vmem:[%s6229_s0 + $0x18] sm:$0xff] }
 0x2d9   : > { %v1822_v39 = vpop.permute.xlu1 %1821  ;;  %5024 = vmatpush3.bf16.msra.mxu1 %v5021_v31  ;;  %v5073_v37 = vpack.c.bf16 %v2643_v35, %v2642_v34 }
 0x2da   : > { %4692 = vmatprep.mubr.msk.f32.mxu1 %vm963_vm1, %v1825_v38  ;;  %v1826_v40 = vmul.f32 %v1822_v39, %v1816_v16  ;;  %5026 = vmatprep.subr.bf16.mxu1 %v5025_v43  ;;  %v2726_v38 = vld [vmem:[%s6230_s5] sm:$0xff]  ;;  %v2727_v39 = vld [vmem:[%s6230_s5 + $0x8] sm:$0xff] }
 0x2dc   : > { %4693 = vmatmul.mubr.msk.f32.gmra.mrb[14].mxu1 %vm963_vm1, %v1826_v40  ;;  %v5077_v40 = vpack.c.bf16 %v2727_v39, %v2726_v38 }
 0x2dd   : > { %5028 = vmatpush3.bf16.msra.mxu1 %v5025_v43  ;;  %v5081_v43 = vpack.c.bf16 %v2729_v42, %v2728_v41 }
 0x2de   : > { %5030 = vmatprep.subr.bf16.mxu1 %v5029_v47 }
 0x3a3   : > { %v4685_v49 = vpop.f32.mrb[8].mxu1 }
 0x3a4   : > { %v1932_v50 = vadd.f32 %v4685_v49, %v4279_v48  ;;  %v1926_v55 = vpop.f32.mrb[9].mxu1 }
 0x3a5   : > { %v1927_v56 = vadd.f32 %v4279_v48, %v1926_v55  ;;  %v4333_v55 = vld [vmem:[%s6230_s5 + $0x50] sm:$0xff] }
 0x3a6   : > { %v1974_v58 = vmul.f32 0.01, %v1932_v50  ;;  %vm1966_vm1 = vcmp.gt.f32.partialorder %v1932_v50, 0.0 }
 0x3a7   : > { %vm1965_vm5 = vcmp.gt.f32.partialorder %v1927_v56, 0.0  ;;  %v1973_v61 = vmul.f32 0.01, %v1927_v56  ;;  %v4688_v62 = vpop.f32.mrb[10].mxu1 }
 0x3a8   : > { %v1942_v0 = vadd.f32 %v4688_v62, %v4279_v48  ;;  %v1936_v1 = vpop.f32.mrb[11].mxu1  ;;  %v1982_v7 = vsel %vm1966_vm1, %v1932_v50, %v1974_v58 }
 0x3a9   : > { %v1937_v4 = vadd.f32 %v4279_v48, %v1936_v1  ;;  %v1981_v5 = vsel %vm1965_vm5, %v1927_v56, %v1973_v61  ;;  %v4334_v56 = vld [vmem:[%s6230_s5 + $0x58] sm:$0xff]  ;;  %v5353_v61 = vmov 0.0|0.0  }
 0x3aa   : > { %v1976_v8 = vmul.f32 0.01, %v1942_v0  ;;  %4711 = vmatprep.mubr.msk.f32.mxu1 %vm2004_vm6, %v1981_v5  ;;  %vm1968_vm7 = vcmp.gt.f32.partialorder %v1942_v0, 0.0  ;;  %v5097_v58 = vpack.c.bf16 %v4334_v56, %v4333_v55 }
 0x3ab   : > { %vm1967_vm8 = vcmp.gt.f32.partialorder %v1937_v4, 0.0  ;;  %v1975_v13 = vmul.f32 0.01, %v1937_v4  ;;  %v4691_v14 = vpop.f32.mrb[12].mxu1  ;;  %4712 = vmatmul.mubr.msk.f32.vlgmr.msra.gmra.mrb[16].mxu1 %vm2004_vm6, %v1982_v7  ;;  %v2992_v7 = vld [vmem:[%s6181_s15 + $0x18] sm:$0xff] }
 0x3ac   : > { %v1952_v15 = vadd.f32 %v4691_v14, %v4279_v48  ;;  %v1946_v16 = vpop.f32.mrb[13].mxu1  ;;  %5032 = vmatpush3.bf16.msra.mxu1 %v5029_v47  ;;  %v1984_v22 = vsel %vm1968_vm7, %v1942_v0, %v1976_v8  ;;  %v4327_v47 = vld [vmem:[%s6230_s5 + $0x30] sm:$0xff] }
 0x3ad   : > { %v1947_v18 = vadd.f32 %v4279_v48, %v1946_v16  ;;  %v1983_v19 = vsel %vm1967_vm8, %v1937_v4, %v1975_v13  ;;  %5034 = vmatprep.subr.bf16.mxu1 %v5033_v6  ;;  %v2989_v4 = vld [vmem:[%s6181_s15] sm:$0xff]  ;;  %v5109_v13 = vpack.c.bf16 %v2994_v11, %v2993_v10  ;;  %v2995_v14 = vld [vmem:[%s6181_s15 + $0x30] sm:$0xff] }
 0x3ae   : > { %v1978_v21 = vmul.f32 0.01, %v1952_v15  ;;  %4714 = vmatprep.mubr.msk.f32.mxu1 %vm2004_vm6, %v1983_v19  ;;  %vm1970_vm9 = vcmp.gt.f32.partialorder %v1952_v15, 0.0  ;;  %v3732_v19 = vld [vmem:[%s6187_s21 + $0x8] sm:$0xff] }
 0x3af   : > { %vm1969_vm10 = vcmp.gt.f32.partialorder %v1947_v18, 0.0  ;;  %v1977_v23 = vmul.f32 0.01, %v1947_v18  ;;  %v4694_v24 = vpop.f32.mrb[14].mxu1  ;;  %4715 = vmatmul.mubr.msk.f32.gmra.mrb[18].mxu1 %vm2004_vm6, %v1984_v22  ;;  %v3734_v22 = vld [vmem:[%s6187_s21 + $0x18] sm:$0xff] }
 0x3b0   : > { %v1962_v25 = vadd.f32 %v4694_v24, %v4279_v48  ;;  %v1956_v26 = vpop.f32.mrb[15].mxu1  ;;  %5036 = vmatpush3.bf16.msra.mxu1 %v5033_v6  ;;  %v1986_v30 = vsel %vm1970_vm9, %v1952_v15, %v1978_v21  ;;  %v2991_v6 = vld [vmem:[%s6181_s15 + $0x10] sm:$0xff]  ;;  %v2996_v15 = vld [vmem:[%s6181_s15 + $0x38] sm:$0xff]  ;;  %v4288_v24 = vld [vmem:[%s6231_s14] ss:$0 sm:$0xff]  ;;  %s930_s14 = scalar_lea.vmem %s6191_s25, %s5518_s9  ;;  %s4251_s9 = sshll.u32 %s6237_s7, 2 }
 0x3b1   : > { %v1957_v27 = vadd.f32 %v4279_v48, %v1956_v26  ;;  %v1985_v28 = vsel %vm1969_vm10, %v1947_v18, %v1977_v23  ;;  %5070 = vmatprep.subr.bf16.mxu1 %v5069_v20  ;;  %v4328_v48 = vld [vmem:[%s6230_s5 + $0x38] sm:$0xff]  ;;  %v5105_v8 = vpack.c.bf16 %v2992_v7, %v2991_v6  ;;  %v5113_v16 = vpack.c.bf16 %v2996_v15, %v2995_v14  ;;  %v3731_v18 = vld [vmem:[%s6187_s21] sm:$0xff]  ;;  %v3733_v21 = vld [vmem:[%s6187_s21 + $0x10] sm:$0xff]  ;;  %s941_s0 = scalar_lea.vmem %s6193_s27, %s4251_s9 }
 0x3b2   : > { %v1980_v29 = vmul.f32 0.01, %v1962_v25  ;;  %4717 = vmatprep.mubr.msk.f32.mxu1 %vm2004_vm6, %v1985_v28  ;;  %vm1972_vm11 = vcmp.gt.f32.partialorder %v1962_v25, 0.0  ;;  %v5089_v49 = vpack.c.bf16 %v4328_v48, %v4327_v47  ;;  %v5199_v23 = vpack.c.bf16 %v3734_v22, %v3733_v21 }
 0x3b3   : > { %vm1971_vm12 = vcmp.gt.f32.partialorder %v1957_v27, 0.0  ;;  %v1979_v31 = vmul.f32 0.01, %v1957_v27  ;;  %4718 = vmatmul.mubr.msk.f32.gmra.mrb[20].mxu1 %vm2004_vm6, %v1986_v30 }
 0x3b4   : > { %v1988_v33 = vsel %vm1972_vm11, %v1962_v25, %v1980_v29 }
 0x3b5   : > { %v1987_v32 = vsel %vm1971_vm12, %v1957_v27, %v1979_v31 }
 0x3b6   : > { %4720 = vmatprep.mubr.msk.f32.mxu1 %vm2004_vm6, %v1987_v32 }
 0x3b7   : > { %4721 = vmatmul.mubr.msk.f32.gmra.mrb[22].mxu1 %vm2004_vm6, %v1988_v33 }
 0x3b8   : > { %4731 = vmatprep.mubr.msk.f32.mxu1 %vm2217_vm0, %v5571_v36 }
 0x3bb   : > { %4732 = vmatmul.mubr.msk.f32.vlgmr.msra.gmra.mrb[24].mxu1 %vm2217_vm0, %v5592_v45 }
 0x3bc   : > { %5072 = vmatpush3.bf16.msra.mxu1 %v5069_v20  ;;  %4786 = vmatprep.mubr.msk.f32.mxu1 %vm2217_vm0, %v5571_v36  ;;  %v4326_v36 = vld [vmem:[%s6230_s5 + $0x28] sm:$0xff]  ;;  %v5196_v20 = vpack.c.bf16 %v3732_v19, %v3731_v18 }
 0x3bd   : > { %5074 = vmatprep.subr.bf16.mxu1 %v5073_v37  ;;  %v5085_v46 = vpack.c.bf16 %v4326_v36, %v4325_v44 }
 0x3c0   : > { %5076 = vmatpush3.bf16.msra.mxu1 %v5073_v37 }
 0x3c1   : > { %5078 = vmatprep.subr.bf16.mxu1 %v5077_v40 }
 0x3c3   : > { %4787 = vmatmul.mubr.msk.f32.vlgmr.msra.gmra.mrb[26].mxu1 %vm2217_vm0, %v5592_v45  ;;  %v4331_v45 = vld [vmem:[%s6230_s5 + $0x40] sm:$0xff] }
 0x3c4   : > { %5080 = vmatpush3.bf16.msra.mxu1 %v5077_v40  ;;  %4797 = vmatprep.mubr.msk.f32.mxu1 %vm2217_vm0, %v5604_v51  ;;  %v4332_v51 = vld [vmem:[%s6230_s5 + $0x48] sm:$0xff] }
 0x3c5   : > { %5082 = vmatprep.subr.bf16.mxu1 %v5081_v43  ;;  %v5093_v50 = vpack.c.bf16 %v4332_v51, %v4331_v45 }
 0x3c8   : > { %5084 = vmatpush3.bf16.msra.mxu1 %v5081_v43 }
 0x3c9   : > { %5086 = vmatprep.subr.bf16.mxu1 %v5085_v46 }
 0x3cb   : > { %4798 = vmatmul.mubr.msk.f32.vlgmr.msra.gmra.mrb[28].mxu1 %vm2217_vm0, %v5610_v53  ;;  %v3644_v53 = vrot.slane %v5530_v9, 4 }
 0x3cc   : > { %5088 = vmatpush3.bf16.msra.mxu1 %v5085_v46  ;;  %4808 = vmatprep.mubr.msk.f32.mxu1 %vm2217_vm0, %v5607_v52 }
 0x3cd   : > { %5090 = vmatprep.subr.bf16.mxu1 %v5089_v49  ;;  %v3645_v59 = vmax.f32 %v5530_v9, %v3644_v53 }
 0x3d0   : > { %5092 = vmatpush3.bf16.msra.mxu1 %v5089_v49 }
 0x3d1   : > { %5094 = vmatprep.subr.bf16.mxu1 %v5093_v50 }
 0x3d3   : > { %4809 = vmatmul.mubr.msk.f32.vlgmr.msra.gmra.mrb[28].mxu1 %vm2217_vm0, %v5613_v54 }
 0x3d4   : > { %5096 = vmatpush3.bf16.msra.mxu1 %v5093_v50  ;;  %4819 = vmatprep.mubr.msk.f32.mxu1 %vm2217_vm0, %v5626_v57 }
 0x3d5   : > { %5098 = vmatprep.subr.bf16.mxu1 %v5097_v58 }
 0x3d8   : > { %5100 = vmatpush3.bf16.msra.mxu1 %v5097_v58 }
 0x3d9   : > { %5134 = vmatprep.subr.bf16.mxu1 %v5077_v40 }
 0x3db   : > { %4820 = vmatmul.mubr.msk.f32.vlgmr.msra.gmra.mrb[28].mxu1 %vm2217_vm0, %v5646_v2 }
 0x3dc   : > { %5136 = vmatpush3.bf16.msra.mxu1 %v5077_v40  ;;  %4868 = vmatprep.mubr.msk.f32.mxu1 %vm2217_vm0, %v5607_v52  ;;  %v3646_v52 = vrot.slane %v3645_v59, 2 }
 0x3dd   : > { %5138 = vmatprep.subr.bf16.mxu1 %v5081_v43 }
 0x3de   : > { %v3647_v9 = vmax.f32 %v3645_v59, %v3646_v52 }
 0x3e0   : > { %5140 = vmatpush3.bf16.msra.mxu1 %v5081_v43  ;;  %v3648_v62 = vrot.slane %v3647_v9, 1 }
 0x3e1   : > { %5142 = vmatprep.subr.bf16.mxu1 %v5085_v46 }
 0x3e2   : > { %v3649_v1 = vmax.f32 %v3647_v9, %v3648_v62 }
 0x3e3   : > { %4869 = vmatmul.mubr.msk.f32.vlgmr.msra.gmra.mrb[30].mxu1 %vm2217_vm0, %v5613_v54  ;;  %v3650_v54 = vld [vmem:[%s6185_s19] sm:$0xff] }
 0x3e4   : > { %5144 = vmatpush3.bf16.msra.mxu1 %v5085_v46  ;;  %4879 = vmatprep.mubr.msk.f32.mxu1 %vm2217_vm0, %v5626_v57  ;;  %v3651_v57 = vld [vmem:[%s6185_s19 + $0x8] sm:$0xff] }
 0x3e5   : > { %5146 = vmatprep.subr.bf16.mxu1 %v5089_v49  ;;  %v5190_v60 = vpack.c.bf16 %v3651_v57, %v3650_v54 }
 0x3e8   : > { %5148 = vmatpush3.bf16.msra.mxu1 %v5089_v49 }
 0x3e9   : > { %5150 = vmatprep.subr.bf16.mxu1 %v5093_v50 }
 0x3eb   : > { %4880 = vmatmul.mubr.msk.f32.vlgmr.msra.gmra.mrb[30].mxu1 %vm2217_vm0, %v5646_v2  ;;  %v3652_v2 = vld [vmem:[%s6185_s19 + $0x10] sm:$0xff] }
 0x3ec   : > { %5152 = vmatpush3.bf16.msra.mxu1 %v5093_v50  ;;  %4890 = vmatprep.mubr.msk.f32.mxu1 %vm2217_vm0, %v5649_v3  ;;  %v3653_v3 = vld [vmem:[%s6185_s19 + $0x18] sm:$0xff] }
 0x3ed   : > { %5154 = vmatprep.subr.bf16.mxu1 %v5097_v58  ;;  %v5193_v0 = vpack.c.bf16 %v3653_v3, %v3652_v2 }
 0x3f0   : > { %5156 = vmatpush3.bf16.msra.mxu1 %v5097_v58 }
 0x3f1   : > { %5189 = vmatprep.subr.bf16.mxu1 %v5353_v61 }
 0x3f3   : > { %4891 = vmatmul.mubr.msk.f32.vlgmr.msra.gmra.mrb[30].mxu1 %vm2217_vm0, %v5643_v63  ;;  %v2990_v63 = vld [vmem:[%s6181_s15 + $0x8] sm:$0xff] }
 0x3f4   : > { %5191 = vmatpush3.bf16.msra.mxu1 %v5190_v60  ;;  %4939 = vmatprep.mubr.msk.f32.mxu1 %vm5354_vm13, %v5351_v17  ;;  %v5101_v5 = vpack.c.bf16 %v2990_v63, %v2989_v4 }
 0x3f5   : > { %5192 = vmatprep.subr.bf16.mxu1 %v5353_v61 }
 0x3f6   : > { %5102 = vmatprep.subr.bf16.mxu0 %v5101_v5 }
 0x3f7   : > { %5104 = vmatpush3.bf16.msra.mxu0 %v5101_v5 }
 0x3f8   : > { %5194 = vmatpush3.bf16.msra.mxu1 %v5193_v0  ;;  %5106 = vmatprep.subr.bf16.mxu0 %v5105_v8 }
 0x3f9   : > { %5195 = vmatprep.subr.bf16.mxu1 %v5353_v61 }
 0x3fb   : > { %4940 = vmatmul.mubr.msk.f32.vlgmr.msra.gmra.mrb[32].mxu1 %vm2217_vm0, %v3649_v1  ;;  %5108 = vmatpush3.bf16.msra.mxu0 %v5105_v8 }
 0x3fc   : > { %4950 = vmatprep.mubr.msk.f32.mxu1 %vm5354_vm13, %v5351_v17  ;;  %5110 = vmatprep.subr.bf16.mxu0 %v5109_v13  ;;  %vm4023_vm13 = vcmask 516096  }
 0x3fd   : > { %5197 = vmatpush3.bf16.msra.mxu1 %v5196_v20 }
 0x3fe   : > { %5198 = vmatprep.subr.bf16.mxu1 %v5353_v61 }
 0x3ff   : > { %5112 = vmatpush3.bf16.msra.mxu0 %v5109_v13 }
 0x400   : > { %5114 = vmatprep.subr.bf16.mxu0 %v5113_v16 }
 0x401   : > { %5200 = vmatpush3.bf16.msra.mxu1 %v5199_v23 }
 0x403   : > { %5116 = vmatpush3.bf16.msra.mxu0 %v5113_v16 }
 0x47e   : > { %v4713_v25 = vpop.f32.mrb[16].mxu1 }
 0x47f   : > { %v2101_v26 = vadd.f32 %v4713_v25, %v4288_v24  ;;  %v2095_v27 = vpop.f32.mrb[17].mxu1 }
 0x480   : > { %v2096_v28 = vadd.f32 %v4288_v24, %v2095_v27 }
 0x481   : > { %v2143_v30 = vmul.f32 0.01, %v2101_v26  ;;  %vm2135_vm14 = vcmp.gt.f32.partialorder %v2101_v26, 0.0 }
 0x482   : > { %v4716_v29 = vpop.f32.mrb[18].mxu1  ;;  %v2142_v33 = vmul.f32 0.01, %v2096_v28  ;;  %vm2134_vm15 = vcmp.gt.f32.partialorder %v2096_v28, 0.0 }
 0x483   : > { %v2111_v31 = vadd.f32 %v4716_v29, %v4288_v24  ;;  %v2105_v32 = vpop.f32.mrb[19].mxu1  ;;  %v2151_v39 = vsel %vm2135_vm14, %v2101_v26, %v2143_v30 }
 0x484   : > { %v2106_v34 = vadd.f32 %v4288_v24, %v2105_v32  ;;  %v2150_v43 = vsel %vm2134_vm15, %v2096_v28, %v2142_v33  ;;  %v4320_v33 = vld [vmem:[%s6178_s12] ss:$0 sm:$0xff] }
 0x485   : > { %vm2137_vm2 = vcmp.gt.f32.partialorder %v2111_v31, 0.0  ;;  %v2145_v35 = vmul.f32 0.01, %v2111_v31 }
 0x486   : > { %vm2136_vm3 = vcmp.gt.f32.partialorder %v2106_v34, 0.0  ;;  %v2144_v37 = vmul.f32 0.01, %v2106_v34  ;;  %v4719_v38 = vpop.f32.mrb[20].mxu1 }
 0x487   : > { %v2153_v40 = vsel %vm2137_vm2, %v2111_v31, %v2145_v35  ;;  %v2121_v41 = vadd.f32 %v4719_v38, %v4288_v24  ;;  %v2115_v42 = vpop.f32.mrb[21].mxu1 }
 0x488   : > { %v2159_v44 = vmax.f32 %v2151_v39, %v2153_v40  ;;  %v2152_v36 = vsel %vm2136_vm3, %v2106_v34, %v2144_v37  ;;  %v2116_v46 = vadd.f32 %v4288_v24, %v2115_v42 }
 0x489   : > { %v2158_v47 = vmax.f32 %v2150_v43, %v2152_v36  ;;  %vm2139_vm4 = vcmp.gt.f32.partialorder %v2121_v41, 0.0  ;;  %v2147_v48 = vmul.f32 0.01, %v2121_v41 }
 0x48a   : > { %vm2138_vm1 = vcmp.gt.f32.partialorder %v2116_v46, 0.0  ;;  %v2146_v49 = vmul.f32 0.01, %v2116_v46  ;;  %v4722_v45 = vpop.f32.mrb[22].mxu1 }
 0x48b   : > { %v2155_v51 = vsel %vm2139_vm4, %v2121_v41, %v2147_v48  ;;  %v2131_v50 = vadd.f32 %v4722_v45, %v4288_v24  ;;  %v2125_v55 = vpop.f32.mrb[23].mxu1 }
 0x48c   : > { %v2161_v56 = vmax.f32 %v2159_v44, %v2155_v51  ;;  %v2154_v58 = vsel %vm2138_vm1, %v2116_v46, %v2146_v49  ;;  %v2126_v53 = vadd.f32 %v4288_v24, %v2125_v55  ;;  %v4339_v46 = vld [vmem:[%s6181_s15 + $0x80] sm:$0xff]  ;;  %vm4056_vm1 = vcmp.lt.s32.totalorder %v949_v12, 512 }
 0x48d   : > { %v2160_v59 = vmax.f32 %v2158_v47, %v2154_v58  ;;  %vm2141_vm5 = vcmp.gt.f32.partialorder %v2131_v50, 0.0  ;;  %v2149_v52 = vmul.f32 0.01, %v2131_v50  ;;  %v4340_v47 = vld [vmem:[%s6181_s15 + $0x88] sm:$0xff] }
 0x48e   : > { %vm2140_vm7 = vcmp.gt.f32.partialorder %v2126_v53, 0.0  ;;  %v2148_v54 = vmul.f32 0.01, %v2126_v53  ;;  %v5917_v57 = vpop.f32.mrb[24].mxu1 }
 0x48f   : > { %v2157_v9 = vsel %vm2141_vm5, %v2131_v50, %v2149_v52  ;;  %v5919_v60 = vpop.f32.mrb[25].mxu1  ;;  %v5117_v50 = vpack.c.bf16 %v4340_v47, %v4339_v46  ;;  %v3824_v46 = vld [vmem:[%s6189_s23 + $0x60] sm:$0xff] }
 0x490   : > { %v2163_v61 = vmax.f32 %v2161_v56, %v2157_v9  ;;  %v2156_v2 = vsel %vm2140_vm7, %v2126_v53, %v2148_v54 }
 0x491   : > { %v2162_v3 = vmax.f32 %v2160_v59, %v2156_v2  ;;  %5118 = vmatprep.subr.bf16.mxu0 %v5117_v50 }
 0x492   : > { %v2165_v62 = vsub.f32 %v2151_v39, %v2163_v61  ;;  %v2171_v0 = vsub.f32 %v2153_v40, %v2163_v61  ;;  %v2177_v1 = vsub.f32 %v2155_v51, %v2163_v61  ;;  %v2183_v4 = vsub.f32 %v2157_v9, %v2163_v61  ;;  %v4341_v9 = vld [vmem:[%s6181_s15 + $0x90] sm:$0xff]  ;;  %v4342_v61 = vld [vmem:[%s6181_s15 + $0x98] sm:$0xff] }
 0x493   : > { %v2164_v63 = vsub.f32 %v2150_v43, %v2162_v3  ;;  %v2170_v5 = vsub.f32 %v2152_v36, %v2162_v3  ;;  %v2176_v6 = vsub.f32 %v2154_v58, %v2162_v3  ;;  %v2182_v7 = vsub.f32 %v2156_v2, %v2162_v3 }
 0x494   : > { %v2168_v8 = vmul.f32 1.442695, %v2165_v62  ;;  %v2174_v10 = vmul.f32 1.442695, %v2171_v0  ;;  %v2180_v11 = vmul.f32 1.442695, %v2177_v1  ;;  %v5121_v62 = vpack.c.bf16 %v4342_v61, %v4341_v9 }
 0x495   : > { %v2186_v13 = vmul.f32 1.442695, %v2183_v4  ;;  %v2166_v14 = vmul.f32 1.442695, %v2164_v63  ;;  %v2172_v16 = vmul.f32 1.442695, %v2170_v5 }
 0x496   : > { %5303 = vpow2.f32 %v2168_v8  ;;  %v4788_v15 = vpop.f32.mrb[26].mxu1  ;;  %v2178_v19 = vmul.f32 1.442695, %v2176_v6  ;;  %v2184_v20 = vmul.f32 1.442695, %v2182_v7  ;;  %v4343_v0 = vld [vmem:[%s6181_s15 + $0xa0] sm:$0xff] }
 0x497   : > { %5305 = vpow2.f32 %v2174_v10  ;;  %v2717_v18 = vpop.f32.mrb[27].mxu1  ;;  %v2723_v37 = vadd.f32 %v4788_v15, %v4320_v33  ;;  %v4344_v1 = vld [vmem:[%s6181_s15 + $0xa8] sm:$0xff]  ;;  %v4345_v63 = vld [vmem:[%s6181_s15 + $0xb0] sm:$0xff]  ;;  %v4346_v5 = vld [vmem:[%s6181_s15 + $0xb8] sm:$0xff] }
 0x498   : > { %5307 = vpow2.f32 %v2180_v11  ;;  %v2718_v38 = vadd.f32 %v4320_v33, %v2717_v18  ;;  %v5125_v4 = vpack.c.bf16 %v4344_v1, %v4343_v0  ;;  %v5129_v6 = vpack.c.bf16 %v4346_v5, %v4345_v63  ;;  %v3840_v9 = vld [vmem:[%s6189_s23 + $0xe0] sm:$0xff]  ;;  %v4360_v5 = vld [vmem:[%s6181_s15 + $0x68] sm:$0xff] }
 0x499   : > { %5309 = vpow2.f32 %v2186_v13  ;;  %v3654_v13 = vld [vmem:[%s6186_s20] sm:$0x1] }
 0x49a   : > { %5311 = vpow2.f32 %v2166_v14  ;;  %v4359_v63 = vld [vmem:[%s6181_s15 + $0x60] sm:$0xff] }
 0x49b   : > { %5313 = vpow2.f32 %v2172_v16 }
 0x49c   : > { %5315 = vpow2.f32 %v2178_v19 }
 0x49d   : > { %5317 = vpow2.f32 %v2184_v20  ;;  %v4355_v20 = vld [vmem:[%s6181_s15 + $0x40] sm:$0xff] }
 0x4a0   : > { %v5304_v21 = vpop.eup %5303 }
 0x4a1   : > { %v5306_v22 = vpop.eup %5305 }
 0x4a2   : > { %v5308_v23 = vpop.eup %5307  ;;  %v2189_v24 = vadd.f32 %v5306_v22, %v5304_v21 }
 0x4a3   : > { %v5310_v25 = vpop.eup %5309 }
 0x4a4   : > { %v5312_v26 = vpop.eup %5311  ;;  %v2191_v27 = vadd.f32 %v5308_v23, %v2189_v24 }
 0x4a5   : > { %v5314_v28 = vpop.eup %5313 }
 0x4a6   : > { %v2193_v29 = vadd.f32 %v5310_v25, %v2191_v27  ;;  %v2188_v30 = vadd.f32 %v5314_v28, %v5312_v26  ;;  %v5316_v31 = vpop.eup %5315 }
 0x4a7   : > { %v5318_v34 = vpop.eup %5317 }
 0x4a8   : > { %5319 = vrcp.f32 %v2193_v29  ;;  %v2190_v32 = vadd.f32 %v5316_v31, %v2188_v30 }
 0x4aa   : > { %v2192_v35 = vadd.f32 %v5318_v34, %v2190_v32 }
 0x4ac   : > { %5321 = vrcp.f32 %v2192_v35  ;;  %v3813_v35 = vld [vmem:[%s6189_s23 + $0x8] sm:$0xff] }
 0x4ae   : > { %v4821_v39 = vpop.f32.mrb[28].mxu1 }
 0x4af   : > { %v5237_v40 = vadd.f32 %v4821_v39, %v2723_v37  ;;  %v2960_v41 = vpop.f32.mrb[29].mxu1  ;;  %v3812_v39 = vld [vmem:[%s6189_s23] sm:$0xff] }
 0x4b0   : > { %v5238_v42 = vadd.f32 %v2960_v41, %v2718_v38 }
 0x4b1   : > { %vm2972_vm8 = vcmp.gt.f32.partialorder %v5237_v40, 0.0  ;;  %v2974_v44 = vmul.f32 0.01, %v5237_v40 }
 0x4b2   : > { %v5320_v43 = vpop.eup %5319  ;;  %v2973_v36 = vmul.f32 0.01, %v5238_v42  ;;  %vm2971_vm9 = vcmp.gt.f32.partialorder %v5238_v42, 0.0 }
 0x4b3   : > { %v2199_v48 = vmul.f32 %v5320_v43, %v5304_v21  ;;  %v2203_v49 = vmul.f32 %v5320_v43, %v5308_v23  ;;  %v2205_v45 = vmul.f32 %v5320_v43, %v5310_v25  ;;  %v5930_v51 = vmul.f32 %v5320_v43, %v5306_v22  ;;  %v4356_v21 = vld [vmem:[%s6181_s15 + $0x48] sm:$0xff] }
 0x4b4   : > { %v2976_v56 = vsel %vm2972_vm8, %v5237_v40, %v2974_v44  ;;  %v2975_v58 = vsel %vm2971_vm9, %v5238_v42, %v2973_v36  ;;  %v5157_v22 = vpack.c.bf16 %v4356_v21, %v4355_v20  ;;  %v3816_v40 = vld [vmem:[%s6189_s23 + $0x20] sm:$0xff]  ;;  %v3821_v42 = vld [vmem:[%s6189_s23 + $0x48] sm:$0xff]  ;;  %v4367_v21 = vld [vmem:[%s6181_s15 + $0xd0] sm:$0xff] }
 0x4b5   : > { %2983 = vrot.lane.b32.xlu1 %v2203_v49, %s5355_s6  ;;  %v2978_v3 = vmul.f32 %v2976_v56, %v2199_v48  ;;  %v5203_v41 = vpack.c.bf16 %v3816_v40, %v3812_v39  ;;  %v3825_v43 = vld [vmem:[%s6189_s23 + $0x68] sm:$0xff]  ;;  %v3820_v36 = vld [vmem:[%s6189_s23 + $0x40] sm:$0xff] }
 0x4b6   : > { %v5322_v55 = vpop.eup %5321  ;;  %v5205_v44 = vpack.c.bf16 %v3825_v43, %v3821_v42  ;;  %v5207_v47 = vpack.c.bf16 %v3824_v46, %v3820_v36  ;;  %v3829_v48 = vld [vmem:[%s6189_s23 + $0x88] sm:$0xff]  ;;  %v3826_v42 = vld [vmem:[%s6189_s23 + $0x70] sm:$0xff]  ;;  %v3835_v36 = vld [vmem:[%s6189_s23 + $0xb8] sm:$0xff] }
 0x4b7   : > { %v2198_v53 = vmul.f32 %v5322_v55, %v5312_v26  ;;  %v2202_v59 = vmul.f32 %v5322_v55, %v5316_v31  ;;  %v2204_v52 = vmul.f32 %v5322_v55, %v5318_v34  ;;  %v5933_v54 = vmul.f32 %v5322_v55, %v5314_v28  ;;  %v3833_v49 = vld [vmem:[%s6189_s23 + $0xa8] sm:$0xff]  ;;  %v3832_v55 = vld [vmem:[%s6189_s23 + $0xa0] sm:$0xff] }
 0x4b9   : > { %v2977_v2 = vmul.f32 %v2975_v58, %v2198_v53  ;;  %2981 = vrot.lane.b32.xlu0 %v2202_v59, %s5355_s6  ;;  %3419 = vrot.lane.b32.xlu1 %v2205_v45, %s5355_s6  ;;  %v5209_v45 = vpack.c.bf16 %v3833_v49, %v3829_v48  ;;  %v3841_v53 = vld [vmem:[%s6189_s23 + $0xe8] sm:$0xff]  ;;  %v3830_v48 = vld [vmem:[%s6189_s23 + $0x90] sm:$0xff] }
 0x4ba   : > { %v3834_v49 = vld [vmem:[%s6189_s23 + $0xb0] sm:$0xff] }
 0x4bb   : > { %4838 = vmatprep.mubr.msk.f32.mxu0 %vm2004_vm6, %v2977_v2  ;;  %v4357_v2 = vld [vmem:[%s6181_s15 + $0x50] sm:$0xff] }
 0x4bc   : > { %4839 = vmatmul.mubr.msk.f32.vlgmr.msra.gmra.mrb[10].mxu0 %vm2004_vm6, %v2978_v3  ;;  %v4358_v3 = vld [vmem:[%s6181_s15 + $0x58] sm:$0xff] }
 0x4bd   : > { %3417 = vrot.lane.b32.xlu0 %v2204_v52, %s5355_s6  ;;  %5120 = vmatpush3.bf16.msra.mxu0 %v5117_v50  ;;  %v3828_v50 = vld [vmem:[%s6189_s23 + $0x80] sm:$0xff]  ;;  %v5161_v0 = vpack.c.bf16 %v4358_v3, %v4357_v2 }
 0x4be   : > { %5122 = vmatprep.subr.bf16.mxu0 %v5121_v62  ;;  %v3836_v52 = vld [vmem:[%s6189_s23 + $0xc0] sm:$0xff] }
 0x4bf   : > { %v5215_v61 = vpack.c.bf16 %v3840_v9, %v3836_v52  ;;  %v3844_v9 = vld [vmem:[%s6190_s24] sm:$0xf] }
 0x4c1   : > { %5124 = vmatpush3.bf16.msra.mxu0 %v5121_v62 }
 0x4c2   : > { %5126 = vmatprep.subr.bf16.mxu0 %v5125_v4 }
 0x4c5   : > { %5128 = vmatpush3.bf16.msra.mxu0 %v5125_v4 }
 0x4c6   : > { %v4892_v7 = vpop.f32.mrb[30].mxu1  ;;  %5130 = vmatprep.subr.bf16.mxu0 %v5129_v6 }
 0x4c7   : > { %v5239_v8 = vadd.f32 %v4892_v7, %v2723_v37  ;;  %v3396_v10 = vpop.f32.mrb[31].mxu1  ;;  %v3817_v37 = vld [vmem:[%s6189_s23 + $0x28] sm:$0xff]  ;;  %v4362_v7 = vld [vmem:[%s6181_s15 + $0x78] sm:$0xff] }
 0x4c8   : > { %v5240_v11 = vadd.f32 %v3396_v10, %v2718_v38  ;;  %v5201_v38 = vpack.c.bf16 %v3817_v37, %v3813_v35  ;;  %v3818_v35 = vld [vmem:[%s6189_s23 + $0x30] sm:$0xff]  ;;  %v3823_v37 = vld [vmem:[%s6189_s23 + $0x58] sm:$0xff] }
 0x4c9   : > { %5132 = vmatpush3.bf16.msra.mxu0 %v5129_v6  ;;  %v3410_v23 = vmul.f32 0.01, %v5239_v8  ;;  %vm3408_vm11 = vcmp.gt.f32.partialorder %v5239_v8, 0.0  ;;  %v5165_v6 = vpack.c.bf16 %v4360_v5, %v4359_v63 }
 0x4ca   : > { %5158 = vmatprep.subr.bf16.mxu0 %v5157_v22  ;;  %v3409_v26 = vmul.f32 0.01, %v5240_v11  ;;  %5202 = vmatprep.subr.bf16.mxu1 %v5201_v38  ;;  %v3827_v38 = vld [vmem:[%s6189_s23 + $0x78] sm:$0xff] }
 0x4cb   : > { %v5970_v29 = vsel %vm3408_vm11, %v5239_v8, %v3410_v23  ;;  %v3735_v8 = vld [vmem:[%s6188_s22] sm:$0x1]  ;;  %v5221_v40 = vpack.c.bf16 %v3827_v38, %v3823_v37 }
 0x4cc   : > { %v3414_v23 = vmul.f32 %v5970_v29, %v5930_v51  ;;  %v4371_v51 = vld [vmem:[%s6181_s15 + $0xf0] sm:$0xff] }
 0x4ce   : > { %v3724_v14 = vpop.f32.mrb[32].mxu1 }
 0x4cf   : > { %v3725_v15 = vadd.f32 %v3724_v14, %v3654_v13  ;;  %v4941_v16 = vpop.f32.mrb[33].mxu1 }
 0x4d0   : > { %v4366_v16 = vld [vmem:[%s6181_s15 + $0xc8] sm:$0xff] }
 0x4d1   : > { %vm3728_vm10 = vcmp.gt.f32.partialorder %v3725_v15, 0.0  ;;  %v3729_v18 = vmul.f32 0.01, %v3725_v15 }
 0x4d3   : > { %v3730_v19 = vsel %vm3728_vm10, %v3725_v15, %v3729_v18  ;;  %v4365_v15 = vld [vmem:[%s6181_s15 + $0xc0] sm:$0xff] }
 0x4d4   : > { %4951 = vmatmul.mubr.msk.f32.vlgmr.msra.gmra.mrb[34].mxu1 %vm2217_vm0, %v3730_v19  ;;  %vm3407_vm0 = vcmp.gt.f32.partialorder %v5240_v11, 0.0  ;;  %v5173_v19 = vpack.c.bf16 %v4366_v16, %v4365_v15  ;;  %v4375_v16 = vld [vmem:[%s6183_s17] ss:$0 sm:$0xff] }
 0x4d5   : > { %3933 = vmatprep.mubr.f32.mxu1 %v5351_v17  ;;  %v3411_v32 = vsel %vm3407_vm0, %v5240_v11, %v3409_v26  ;;  %5204 = vmatpush1.bf16.msra.mxu1 %v5203_v41  ;;  %v4370_v26 = vld [vmem:[%s6181_s15 + $0xe8] sm:$0xff]  ;;  %v3822_v41 = vld [vmem:[%s6189_s23 + $0x50] sm:$0xff] }
 0x4d6   : > { %5206 = vmatprep.subr.bf16.mxu1 %v5205_v44  ;;  %v3413_v1 = vmul.f32 %v3411_v32, %v5933_v54  ;;  %v4361_v54 = vld [vmem:[%s6181_s15 + $0x70] sm:$0xff]  ;;  %v3831_v44 = vld [vmem:[%s6189_s23 + $0x98] sm:$0xff]  ;;  %v5223_v46 = vpack.c.bf16 %v3826_v42, %v3822_v41 }
 0x4d7   : > { %v5169_v11 = vpack.c.bf16 %v4362_v7, %v4361_v54 }
 0x4d9   : > { %5208 = vmatpush1.bf16.msra.mxu1 %v5207_v47  ;;  %v5225_v47 = vpack.c.bf16 %v3835_v36, %v3831_v44 }
 0x4da   : > { %5210 = vmatprep.subr.bf16.mxu1 %v5209_v45  ;;  %v3839_v45 = vld [vmem:[%s6189_s23 + $0xd8] sm:$0xff] }
 0x527   : > { %v2984_v24 = vpop.permute.xlu1 %2983 }
 0x528   : > { %v2988_v25 = vmul.f32 %v2984_v24, %v2976_v56  ;;  %v5211_v56 = vpack.c.bf16 %v3832_v55, %v3828_v50  ;;  %v3843_v50 = vld [vmem:[%s6189_s23 + $0xf8] sm:$0xff] }
 0x529   : > { %v5229_v55 = vpack.c.bf16 %v3843_v50, %v3839_v45 }
 0x52a   : > { %3093 = vrot.lane.b32.xlu1 %v2988_v25, %s5355_s6  ;;  %5212 = vmatpush1.bf16.msra.mxu1 %v5211_v56  ;;  %v4369_v25 = vld [vmem:[%s6181_s15 + $0xe0] sm:$0xff]  ;;  %v3838_v56 = vld [vmem:[%s6189_s23 + $0xd0] sm:$0xff] }
 0x52b   : > { %v2982_v27 = vpop.permute.xlu0 %2981  ;;  %v3420_v28 = vpop.permute.xlu1 %3419 }
 0x52c   : > { %v2987_v30 = vmul.f32 %v2982_v27, %v2975_v58  ;;  %v3424_v31 = vmul.f32 %v3420_v28, %v5970_v29  ;;  %v3837_v58 = vld [vmem:[%s6189_s23 + $0xc8] sm:$0xff]  ;;  %v5181_v28 = vpack.c.bf16 %v4370_v26, %v4369_v25  ;;  %v4372_v29 = vld [vmem:[%s6181_s15 + $0xf8] sm:$0xff] }
 0x52d   : > { %v5213_v59 = vpack.c.bf16 %v3841_v53, %v3837_v58  ;;  %v3842_v58 = vld [vmem:[%s6189_s23 + $0xf0] sm:$0xff] }
 0x52e   : > { %3091 = vrot.lane.b32.xlu0 %v2987_v30, %s5355_s6  ;;  %3530 = vrot.lane.b32.xlu1 %v3424_v31, %s5355_s6  ;;  %v5185_v30 = vpack.c.bf16 %v4372_v29, %v4371_v51  ;;  %v3815_v31 = vld [vmem:[%s6189_s23 + $0x18] sm:$0xff]  ;;  %v5231_v53 = vpack.c.bf16 %v3842_v58, %v3838_v56  ;;  %v5356_v29 = vmov 1966171168  }
 0x52f   : > { %v3418_v33 = vpop.permute.xlu0 %3417  ;;  %5214 = vmatprep.subr.bf16.mxu1 %v5213_v59  ;;  %v3847_v59 = vshrl.u32 %v949_v12, 7 }
 0x530   : > { %v3423_v34 = vmul.f32 %v3418_v33, %v3411_v32  ;;  %5216 = vmatpush1.bf16.msra.mxu1 %v5215_v61  ;;  %v3819_v32 = vld [vmem:[%s6189_s23 + $0x38] sm:$0xff] }
 0x531   : > { %v5217_v33 = vpack.c.bf16 %v3819_v32, %v3815_v31  ;;  %v3848_v52 = vsub.s32 0, %v3847_v59  ;;  %v3852_v61 = vsub.s32 1, %v3847_v59  ;;  %v3856_v25 = vsub.s32 2, %v3847_v59 }
 0x532   : > { %3528 = vrot.lane.b32.xlu0 %v3423_v34, %s5355_s6  ;;  %v3814_v34 = vld [vmem:[%s6189_s23 + $0x10] sm:$0xff] }
 0x533   : > { %v5219_v39 = vpack.c.bf16 %v3818_v35, %v3814_v34  ;;  %v3849_v2 = vrot.slane %v3844_v9, %v3848_v52  ;;  %v3853_v3 = vrot.slane %v3844_v9, %v3852_v61  ;;  %v3857_v31 = vrot.slane %v3844_v9, %v3856_v25 }
 0x59c   : > { %v3094_v4 = vpop.permute.xlu1 %3093 }
 0x5a0   : > { %v3092_v62 = vpop.permute.xlu0 %3091  ;;  %v3531_v43 = vpop.permute.xlu1 %3530 }
 0x5a1   : > { %4857 = vmatprep.mubr.msk.f32.mxu0 %vm2004_vm6, %v3092_v62 }
 0x5a2   : > { %4858 = vmatmul.mubr.msk.f32.vlgmr.msra.gmra.mrb[10].mxu0 %vm2004_vm6, %v3094_v4 }
 0x5a3   : > { %5160 = vmatpush3.bf16.msra.mxu0 %v5157_v22  ;;  %4909 = vmatprep.mubr.msk.f32.mxu0 %vm2004_vm6, %v3413_v1  ;;  %v4368_v22 = vld [vmem:[%s6181_s15 + $0xd8] sm:$0xff] }
 0x5a4   : > { %5162 = vmatprep.subr.bf16.mxu0 %v5161_v0  ;;  %v5177_v24 = vpack.c.bf16 %v4368_v22, %v4367_v21  ;;  %v3529_v27 = vpop.permute.xlu0 %3528 }
 0x5a7   : > { %5164 = vmatpush3.bf16.msra.mxu0 %v5161_v0  ;;  %v3805_v10 = vpop.f32.mrb[34].mxu1 }
 0x5a8   : > { %5166 = vmatprep.subr.bf16.mxu0 %v5165_v6  ;;  %v3806_v13 = vadd.f32 %v3805_v10, %v3735_v8  ;;  %v4952_v14 = vpop.f32.mrb[35].mxu1  ;;  %v4297_v8 = vld [vmem:[%s6182_s16] ss:$0 sm:$0xff] }
 0x5a9   : > { %v2294_v10 = vadd.f32 %v5917_v57, %v4297_v8 }
 0x5aa   : > { %vm3809_vm12 = vcmp.gt.f32.partialorder %v3806_v13, 0.0  ;;  %v3810_v18 = vmul.f32 0.01, %v3806_v13 }
 0x5ab   : > { %5168 = vmatpush3.bf16.msra.mxu0 %v5165_v6 }
 0x5ac   : > { %5170 = vmatprep.subr.bf16.mxu0 %v5169_v11  ;;  %v3811_v20 = vsel %vm3809_vm12, %v3806_v13, %v3810_v18 }
 0x5ad   : > { %4024 = vst.msk [vmem:[%s935_s1] sm:$0x1] %vm4023_vm13, %v3811_v20  ;;  %4379 = vmatmul.mubr.msk.f32.vlgmr.msra.gmra.mrb[36].mxu1 %vm2004_vm6, %v3811_v20 }
 0x5af   : > { %5172 = vmatpush3.bf16.msra.mxu0 %v5169_v11  ;;  %v2289_v11 = vadd.f32 %v4297_v8, %v5919_v60 }
 0x5b0   : > { %5174 = vmatprep.subr.bf16.mxu0 %v5173_v19 }
 0x5b2   : > { %4910 = vmatmul.mubr.msk.f32.vlgmr.msra.gmra.mrb[10].mxu0 %vm2004_vm6, %v3414_v23 }
 0x5b3   : > { %5176 = vmatpush3.bf16.msra.mxu0 %v5173_v19  ;;  %4928 = vmatprep.mubr.msk.f32.mxu0 %vm2004_vm6, %v3529_v27  ;;  %v3860_v27 = vsub.s32 3, %v3847_v59 }
 0x5b4   : > { %5178 = vmatprep.subr.bf16.mxu0 %v5177_v24 }
 0x5b5   : > { %v3861_v32 = vrot.slane %v3844_v9, %v3860_v27 }
 0x5b7   : > { %5180 = vmatpush3.bf16.msra.mxu0 %v5177_v24 }
 0x5b8   : > { %5182 = vmatprep.subr.bf16.mxu0 %v5181_v28 }
 0x5bb   : > { %5184 = vmatpush3.bf16.msra.mxu0 %v5181_v28 }
 0x5bc   : > { %5186 = vmatprep.subr.bf16.mxu0 %v5185_v30 }
 0x5bf   : > { %5188 = vmatpush3.bf16.msra.mxu0 %v5185_v30  ;;  %v4032_v30 = vunpack.c.l.s4 %v5356_v29 }
 0x5c0   : > { %5218 = vmatprep.subr.bf16.mxu0 %v5217_v33 }
 0x5c1   : > { %v4033_v34 = vunpack.c.0.s8 %v4032_v30 }
 0x5c2   : > { %4929 = vmatmul.mubr.msk.f32.vlgmr.msra.gmra.mrb[10].mxu0 %vm2004_vm6, %v3531_v43 }
 0x5c3   : > { %5220 = vmatpush1.bf16.msra.mxu0 %v5219_v39  ;;  %4004 = vmatprep.mubr.f32.mxu0 %v5351_v17  ;;  %v5227_v17 = vpack.c.bf16 %v3834_v49, %v3830_v48  ;;  %v4036_v41 = vsub.s32 %v4033_v34, %v3847_v59 }
 0x5c4   : > { %5222 = vmatprep.subr.bf16.mxu0 %v5221_v40 }
 0x5c7   : > { %5224 = vmatpush1.bf16.msra.mxu0 %v5223_v46 }
 0x5c8   : > { %5226 = vmatprep.subr.bf16.mxu0 %v5225_v47 }
 0x5cb   : > { %5228 = vmatpush1.bf16.msra.mxu0 %v5227_v17 }
 0x5cc   : > { %5230 = vmatprep.subr.bf16.mxu0 %v5229_v55 }
 0x5cf   : > { %5232 = vmatpush1.bf16.msra.mxu0 %v5231_v53 }
 0x5d2   : > { %4380 = vmatmul.mubr.msk.f32.vlgmr.msra.gmra.mrb[12].mxu0 %vm2004_vm6, %v3811_v20  ;;  %v4376_v20 = vld [vmem:[%s6184_s18] ss:$0 sm:$0xff] }
 0x680   : > { %v3935_v62 = vpop.f32.mrb[36].mxu1 }
 0x681   : > { %v3936_v0 = vadd.f32 %v3935_v62, %v3849_v2  ;;  %v3937_v1 = vpop.f32.mrb[37].mxu1 }
 0x682   : > { %v3938_v4 = vadd.f32 %v3937_v1, %v3853_v3 }
 0x683   : > { %vm4011_vm14 = vcmp.gt.f32.partialorder %v3936_v0, 0.0  ;;  %v4015_v63 = vmul.f32 0.01, %v3936_v0 }
 0x684   : > { %vm4012_vm15 = vcmp.gt.f32.partialorder %v3938_v4, 0.0  ;;  %v4016_v5 = vmul.f32 0.01, %v3938_v4 }
 0x685   : > { %v4019_v6 = vsel %vm4011_vm14, %v3936_v0, %v4015_v63 }
 0x686   : > { %v4020_v54 = vsel %vm4012_vm15, %v3938_v4, %v4016_v5 }
 0x687   : > { %v4029_v7 = vcombine.low %v4019_v6, %v4020_v54 }
 0x689   : > { %v4037_v36 = vrot.slane %v4029_v7, %v4036_v41 }
 0x695   : > { %v4930_v13 = vpop.f32.mrb[10].mxu0 }
 0x696   : > { %v5234_v14 = vadd.f32 %v4930_v13, %v2294_v10  ;;  %v3602_v15 = vpop.f32.mrb[11].mxu0 }
 0x697   : > { %v5236_v18 = vadd.f32 %v3602_v15, %v2289_v11 }
 0x698   : > { %v3614_v19 = vmax.f32 %v5234_v14, 0.0 }
 0x699   : > { %v3613_v21 = vmax.f32 %v5236_v18, 0.0 }
 0x69a   : > { %v3623_v22 = vmul.f32 %v4375_v16, %v3614_v19 }
 0x69b   : > { %v3622_v23 = vmul.f32 %v4375_v16, %v3613_v21 }
 0x69c   : > { %v3632_v24 = vadd.f32 %v4376_v20, %v3623_v22 }
 0x69d   : > { %v3631_v57 = vadd.f32 %v4376_v20, %v3622_v23 }
 0x69e   : > { %vm3634_vm6 = vcmp.gt.f32.partialorder %v3632_v24, 0.0  ;;  %v3636_v60 = vmul.f32 0.01, %v3632_v24 }
 0x69f   : > { %vm3633_vm2 = vcmp.gt.f32.partialorder %v3631_v57, 0.0  ;;  %v3635_v26 = vmul.f32 0.01, %v3631_v57 }
 0x6a0   : > { %v3638_v28 = vsel %vm3634_vm6, %v3632_v24, %v3636_v60 }
 0x6a1   : > { %3640 = vst [vmem:[%s930_s14 + $0x8] sm:$0xff] %v3638_v28  ;;  %v3637_v51 = vsel %vm3633_vm2, %v3631_v57, %v3635_v26 }
 0x6a2   : > { %3639 = vst [vmem:[%s930_s14] sm:$0xff] %v3637_v51 }
 0x6a5   : > { %v4006_v33 = vpop.f32.mrb[12].mxu0 }
 0x6a6   : > { %v4007_v35 = vadd.f32 %v4006_v33, %v3857_v31  ;;  %v4008_v37 = vpop.f32.mrb[13].mxu0 }
 0x6a7   : > { %v4009_v38 = vadd.f32 %v4008_v37, %v3861_v32 }
 0x6a8   : > { %vm4013_vm3 = vcmp.gt.f32.partialorder %v4007_v35, 0.0  ;;  %v4017_v39 = vmul.f32 0.01, %v4007_v35 }
 0x6a9   : > { %vm4014_vm4 = vcmp.gt.f32.partialorder %v4009_v38, 0.0  ;;  %v4018_v40 = vmul.f32 0.01, %v4009_v38 }
 0x6aa   : > { %v4021_v42 = vsel %vm4013_vm3, %v4007_v35, %v4017_v39 }
 0x6ab   : > { %v4022_v43 = vsel %vm4014_vm4, %v4009_v38, %v4018_v40 }
 0x6ac   : > { %v4030_v44 = vcombine.low %v4021_v42, %v4022_v43 }
 0x6ae   : > { %v4044_v46 = vrot.slane %v4030_v44, %v4036_v41 }
 0x6b0   : > { %v4045_v47 = vcombine.low %v4037_v36, %v4044_v46 }
 0x6b2   : > { %v4052_v48 = vrot.slane %v4045_v47, %v4036_v41 }
 0x6b4   : > { %4058 = vst.msk [vmem:[%s941_s0] sm:$0xf] %vm4056_vm1, %v4052_v48 }
 0x6b5 PF: > { %s38_s8 = sadd.s32 1, %s5345_s8   ;;  %s6232_s7 = smov %s5341_s4 }
 0x6b6   : > { %p35_p5 = scmp.ge.s32.totalorder %s38_s8, 4   ;;  %s6233_s4 = smov %s6235_s30 }
 0x6b8   :  { %37 = sbr.rel (!%p35_p5) target bundleno = 15 (0xf), region = 188 }

</bundles_post_ra>
